<compile_context>
chip_gen: v7x
topology: tpu7x:2x2x1
jax: 0.10.0
libtpu: 0.0.40
codegen_flags: <defaults>
</compile_context>

<pallas_src>
import jax
import jax.numpy as jnp
from jax import lax
from jax.experimental import pallas as pl
from jax.experimental.pallas import tpu as pltpu

LPAD = 8  # sublane-aligned left halo width for the depthwise scratch


def _round_up(x, m):
    return (x + m - 1) // m * m


def _vmem_capacity_bytes():
    """Per-TensorCore VMEM capacity; conservative fallback if unavailable."""
    try:
        return int(pltpu.get_tpu_info().vmem_capacity_bytes)
    except Exception:
        return 64 * 2**20          # v7x per-core VMEM (smallest of v5e/v6e/v7x)


def _kernel_vmem_bytes(nb, h, w, c, cp):
    """Per-grid-step VMEM estimate: double-buffered I/O blocks, depthwise
    scratch, double-buffered weights AND the in-kernel block-sized
    temporaries (x_bf16, y1, tap term + acc, y2_bf16, y3), all at their
    (sublane, lane)-tile-padded VMEM footprints."""
    wp = _round_up(w, 8)           # sublane padding of the W dim
    cl = _round_up(c, 128)         # lane footprint of the unpadded-c blocks
    ws = _round_up(LPAD + w + 1, 8)
    io_blocks = 2 * 2 * nb * h * wp * cl * 4           # x2 in + branch out, 2x buffered
    scratch = nb * (h + 2) * ws * cp * 4                # depthwise padded scratch
    temps = nb * h * wp * (cp * (2 + 4 + 4 + 4 + 2 + 4) + cl * 4)
    weights = 2 * (2 * cp * cp * 2 + (9 + 3) * cp * 4)
    return io_blocks + scratch + temps + weights


def _pick_nb(n, h, w, c, cp, budget_bytes):
    """Largest batch-block size that divides n, fits the VMEM budget and
    (when n >= 2) keeps at least two grid steps so megacore parts (v7x: two
    TensorCores) both get work."""
    best = 1
    for d in range(1, n + 1):
        if n % d:
            continue
        if n >= 2 and n // d < 2:
            continue
        if _kernel_vmem_bytes(d, h, w, c, cp) > budget_bytes:
            continue
        best = d
    return best


def branch_kernel(x_ref, w1_ref, b1_ref, wdw_ref, b2_ref, w2_ref, b3_ref,
                  o_ref, pad_ref):
    """x2 branch for nb batch images, channels-last, channel dim padded to cp
    only inside VMEM:
      1x1 conv (+bias, ReLU) -> 3x3 depthwise conv (+bias) -> 1x1 conv (+bias, ReLU)
    BN scales are pre-folded into w1/wdw/w2.  Matmuls use bf16 operands with
    f32 accumulation; depthwise / bias / ReLU math stays f32."""
    nb, h, w, c = x_ref.shape
    cp = w1_ref.shape[0]
    m = nb * h * w

    # ---- 1x1 conv (matmul over channels) + bias + ReLU ----------------------
    x = x_ref[...].reshape(m, c).astype(jnp.bfloat16)
    if cp > c:                      # lane-pad to cp inside VMEM only
        x = jnp.concatenate([x, jnp.zeros((m, cp - c), jnp.bfloat16)], axis=1)
    y1 = jnp.dot(x, w1_ref[...], preferred_element_type=jnp.float32)
    y1 = jnp.maximum(y1 + b1_ref[...], 0.0).reshape(nb, h, w, cp)

    # ---- 3x3 depthwise conv, stride 1, pad 1 (no activation), f32 -----------
    # Scratch column layout: [unused x (LPAD-1) | 0 | y1 (W cols) | 0] so the
    # big interior store is sublane-aligned (offset LPAD -> unmasked vst).
    # Halos are re-zeroed EVERY step on purpose: the scratch is per-core, so a
    # pl.when(program_id == 0) guard would never fire on the second core of a
    # megacore part.  Only the strips the taps actually read are zeroed.
    zrow = jnp.zeros((nb, 1, w + 2, cp), jnp.float32)
    zcol = jnp.zeros((nb, h, 1, cp), jnp.float32)
    pad_ref[:, 0:1, LPAD - 1:LPAD + w + 1, :] = zrow
    pad_ref[:, h + 1:h + 2, LPAD - 1:LPAD + w + 1, :] = zrow
    pad_ref[:, 1:h + 1, LPAD - 1:LPAD, :] = zcol
    pad_ref[:, 1:h + 1, LPAD + w:LPAD + w + 1, :] = zcol
    pad_ref[:, 1:h + 1, LPAD:LPAD + w, :] = y1     # sublane-aligned interior

    # NOTE: the dx=0/2 tap reads are sublane-offset by +/-1 (mid-tile); fixing
    # that with pltpu.roll is a minor win not worth the lowering risk in this
    # HBM-bound block.
    acc = None
    for dy in range(3):
        for dx in range(3):
            tap = wdw_ref[dy:dy + 1, dx:dx + 1, :].reshape(1, 1, 1, cp)
            col = LPAD - 1 + dx
            term = pad_ref[:, dy:dy + h, col:col + w, :] * tap
            acc = term if acc is None else acc + term
    y2 = acc.reshape(m, cp) + b2_ref[...]

    # ---- 1x1 conv + bias + ReLU ---------------------------------------------
    y3 = jnp.dot(y2.astype(jnp.bfloat16), w2_ref[...],
                 preferred_element_type=jnp.float32)
    y3 = jnp.maximum(y3 + b3_ref[...], 0.0)
    o_ref[...] = y3[:, :c].reshape(nb, h, w, c).astype(o_ref.dtype)


def fold_bn(gamma, beta, mean, var, eps=1e-5):
    scale = gamma / jnp.sqrt(var + eps)
    bias = beta - mean * scale
    return scale.reshape(1, -1), bias.reshape(1, -1)


@jax.jit
def basic_block(x_nchw, params):
    """BasicBlock forward.  x_nchw: [N, C, H, W]  ->  [N, C, H, W]."""
    n, c_total, h, w = x_nchw.shape
    c = c_total // 2                 # split_ratio = 0.5
    cp = _round_up(c, 128)
    pc = cp - c

    # --- fold BN scales into conv weights; matmul weights go to bf16 --------
    w1p = jnp.pad(params["w1"] * params["s1"].reshape(1, c),
                  ((0, pc), (0, pc))).astype(jnp.bfloat16)          # [cp, cp]
    w2p = jnp.pad(params["w2"] * params["s3"].reshape(1, c),
                  ((0, pc), (0, pc))).astype(jnp.bfloat16)          # [cp, cp]
    wdwp = jnp.pad(params["wdw"] * params["s2"].reshape(1, 1, c),
                   ((0, 0), (0, 0), (0, pc)))                       # [3, 3, cp]
    b1p = jnp.pad(params["b1"].reshape(1, c), ((0, 0), (0, pc)))
    b2p = jnp.pad(params["b2"].reshape(1, c), ((0, 0), (0, pc)))
    b3p = jnp.pad(params["b3"].reshape(1, c), ((0, 0), (0, pc)))

    # Only the x2 half goes through the kernel, UNPADDED; x1 stays NCHW.
    x1 = x_nchw[:, :c]                                              # [N, c, H, W]
    x2 = jnp.transpose(x_nchw[:, c:], (0, 2, 3, 1))                 # [N, H, W, c]

    cap = _vmem_capacity_bytes()
    nb = _pick_nb(n, h, w, c, cp, budget_bytes=int(cap * 0.45))
    est = _kernel_vmem_bytes(nb, h, w, c, cp)
    vmem_limit = int(min(cap * 3 // 4, max(2 * est, 32 * 2**20)))
    # TODO(synk): for n == 1 (single-image inference) add a second grid axis
    # over H row-blocks (1-row halo) so both v7x TensorCores get work.
    grid = (n // nb,)

    full = lambda shape: pl.BlockSpec(shape, lambda g: (0,) * len(shape))
    # Weight/bias blocks stay at default double-buffering: they are a few KiB
    # each, so single-buffering them buys back negligible VMEM.
    br = pl.pallas_call(
        branch_kernel,
        out_shape=jax.ShapeDtypeStruct((n, h, w, c), x_nchw.dtype),
        grid=grid,
        in_specs=[
            pl.BlockSpec((nb, h, w, c), lambda g: (g, 0, 0, 0)),    # x2 (unpadded)
            full((cp, cp)), full((1, cp)),                          # w1, b1
            full((3, 3, cp)), full((1, cp)),                        # wdw, b2
            full((cp, cp)), full((1, cp)),                          # w2, b3
        ],
        out_specs=pl.BlockSpec((nb, h, w, c), lambda g: (g, 0, 0, 0)),
        scratch_shapes=[pltpu.VMEM((nb, h + 2, LPAD + w + 1, cp), jnp.float32)],
        compiler_params=pltpu.CompilerParams(
            dimension_semantics=("parallel",),
            vmem_limit_bytes=vmem_limit),
    )(x2, w1p, b1p, wdwp, b2p, w2p, b3p)

    # concat + channel shuffle (groups=2) == per-channel interleave of x1 and
    # the branch; done directly in NCHW so x1 never changes layout, and the
    # final reshape is contiguous (free).
    br_nchw = jnp.transpose(br, (0, 3, 1, 2))                       # [N, c, H, W]
    out = jnp.stack([x1, br_nchw], axis=2).reshape(n, c_total, h, w)
    return out


def reference_basic_block(x_nchw, params):
    """Pure-JAX reference (lax.conv, all f32) for correctness check."""
    N, C, H, W = x_nchw.shape
    c = C // 2
    x1, x2 = x_nchw[:, :c], x_nchw[:, c:]

    def conv1x1(x, w_io, s, b):  # w_io: [in, out]
        w = w_io.T[:, :, None, None]                                # OIHW
        y = lax.conv_general_dilated(x, w, (1, 1), "VALID",
                                     dimension_numbers=("NCHW", "OIHW", "NCHW"))
        return y * s.reshape(1, -1, 1, 1) + b.reshape(1, -1, 1, 1)

    def dwconv3x3(x, wdw, s, b):  # wdw: [3, 3, c]
        w = jnp.transpose(wdw, (2, 0, 1))[:, None, :, :]            # [c,1,3,3]
        y = lax.conv_general_dilated(x, w, (1, 1), ((1, 1), (1, 1)),
                                     dimension_numbers=("NCHW", "OIHW", "NCHW"),
                                     feature_group_count=c)
        return y * s.reshape(1, -1, 1, 1) + b.reshape(1, -1, 1, 1)

    y = jnp.maximum(conv1x1(x2, params["w1"], params["s1"], params["b1"]), 0.0)
    y = dwconv3x3(y, params["wdw"], params["s2"], params["b2"])
    y = jnp.maximum(conv1x1(y, params["w2"], params["s3"], params["b3"]), 0.0)
    out = jnp.concatenate([x1, y], axis=1)
    g = 2
    out = out.reshape(N, g, C // g, H, W).transpose(0, 2, 1, 3, 4)
    return out.reshape(N, C, H, W)


def make_params(key, c):
    """Deterministic parameter init (BN in eval mode, folded to scale/bias)."""
    ks = jax.random.split(key, 12)

    def bn(k1, k2, k3, k4, n):
        gamma = 1.0 + 0.1 * jax.random.normal(k1, (n,), jnp.float32)
        beta = 0.05 * jax.random.normal(k2, (n,), jnp.float32)
        mean = 0.1 * jax.random.normal(k3, (n,), jnp.float32)
        var = 0.5 + 0.5 * jnp.abs(jax.random.normal(k4, (n,), jnp.float32))
        return fold_bn(gamma, beta, mean, var)

    w1 = 0.2 * jax.random.normal(ks[0], (c, c), jnp.float32)        # [in, out]
    wdw = 0.2 * jax.random.normal(ks[1], (3, 3, c), jnp.float32)    # depthwise
    w2 = 0.2 * jax.random.normal(ks[2], (c, c), jnp.float32)        # [in, out]
    s1, b1 = bn(ks[3], ks[4], ks[5], ks[6], c)
    s2, b2 = bn(ks[7], ks[8], ks[9], ks[10], c)
    s3, b3 = bn(*jax.random.split(ks[11], 4), c)
    return dict(w1=w1, s1=s1, b1=b1, wdw=wdw, s2=s2, b2=b2,
                w2=w2, s3=s3, b3=b3)


if __name__ == "__main__":
    key = jax.random.PRNGKey(0)
    kx, kp = jax.random.split(key)

    N, C, H, W = 2, 4, 16, 16
    x = jax.random.normal(kx, (N, C, H, W), jnp.float32)
    params = make_params(kp, C // 2)

    out = jax.block_until_ready(basic_block(x, params))
    ref = jax.block_until_ready(reference_basic_block(x, params))

    assert out.shape == (N, C, H, W)
    # kernel uses bf16 MXU operands vs an all-f32 reference -> loose tolerance
    assert jnp.allclose(out, ref, atol=3e-2, rtol=3e-2), \
        float(jnp.max(jnp.abs(out - ref)))
    print("KERNEL_OK")
</pallas_src>

<mosaic_0001>
module attributes {stable_mosaic.version = 11 : i64} {
  func.func @branch_kernel(%arg0: i32, %arg1: memref<1x16x16x2xf32, #tpu.memory_space<vmem>>, %arg2: memref<128x128xbf16, #tpu.memory_space<vmem>>, %arg3: memref<1x128xf32, #tpu.memory_space<vmem>>, %arg4: memref<3x3x128xf32, #tpu.memory_space<vmem>>, %arg5: memref<1x128xf32, #tpu.memory_space<vmem>>, %arg6: memref<128x128xbf16, #tpu.memory_space<vmem>>, %arg7: memref<1x128xf32, #tpu.memory_space<vmem>>, %arg8: memref<1x16x16x2xf32, #tpu.memory_space<vmem>>, %arg9: memref<1x18x25x128xf32, #tpu.memory_space<vmem>>) attributes {dimension_semantics = [#tpu.dimension_semantics<parallel>], iteration_bounds = array<i64: 2>, scalar_prefetch = 0 : i64, scratch_operands = 1 : i64, tpu.core_type = #tpu.core_type<tc>, window_params = [{transform_indices = @transform_0, window_bounds = array<i64: 1, 16, 16, 2>}, {pipeline_mode = #tpu.pipeline_mode<synchronous>, transform_indices = @transform_1, window_bounds = array<i64: 128, 128>}, {pipeline_mode = #tpu.pipeline_mode<synchronous>, transform_indices = @transform_2, window_bounds = array<i64: 1, 128>}, {pipeline_mode = #tpu.pipeline_mode<synchronous>, transform_indices = @transform_3, window_bounds = array<i64: 3, 3, 128>}, {pipeline_mode = #tpu.pipeline_mode<synchronous>, transform_indices = @transform_4, window_bounds = array<i64: 1, 128>}, {pipeline_mode = #tpu.pipeline_mode<synchronous>, transform_indices = @transform_5, window_bounds = array<i64: 128, 128>}, {pipeline_mode = #tpu.pipeline_mode<synchronous>, transform_indices = @transform_6, window_bounds = array<i64: 1, 128>}, {transform_indices = @transform_7, window_bounds = array<i64: 1, 16, 16, 2>}]} {
    %c0 = arith.constant 0 : index
    %c0_0 = arith.constant 0 : index
    %c0_1 = arith.constant 0 : index
    %c0_2 = arith.constant 0 : index
    %0 = vector.load %arg1[%c0, %c0_0, %c0_1, %c0_2] : memref<1x16x16x2xf32, #tpu.memory_space<vmem>>, vector<1x16x16x2xf32>
    %1 = vector.shape_cast %0 : vector<1x16x16x2xf32> to vector<256x2xf32>
    %2 = arith.truncf %1 : vector<256x2xf32> to vector<256x2xbf16>
    %cst = arith.constant 0.000000e+00 : bf16
    %3 = vector.broadcast %cst : bf16 to vector<256x126xbf16>
    %4 = tpu.concatenate %2, %3 in 1 : vector<256x2xbf16>, vector<256x126xbf16> -> vector<256x128xbf16>
    %c0_3 = arith.constant 0 : index
    %c0_4 = arith.constant 0 : index
    %5 = vector.load %arg2[%c0_3, %c0_4] : memref<128x128xbf16, #tpu.memory_space<vmem>>, vector<128x128xbf16>
    %cst_5 = arith.constant dense<0.000000e+00> : vector<256x128xf32>
    %6 = tpu.matmul %4, %5, %cst_5 {dimension_numbers = #tpu.dot_dimension_numbers<[1], [0], [0], [1], [0, 0, 1, 1], [], []>} : vector<256x128xbf16>, vector<128x128xbf16>, vector<256x128xf32> -> vector<256x128xf32>
    %c0_6 = arith.constant 0 : index
    %c0_7 = arith.constant 0 : index
    %7 = vector.load %arg3[%c0_6, %c0_7] : memref<1x128xf32, #tpu.memory_space<vmem>>, vector<1x128xf32>
    %8 = vector.broadcast %7 : vector<1x128xf32> to vector<256x128xf32>
    %9 = arith.addf %6, %8 : vector<256x128xf32>
    %cst_8 = arith.constant 0.000000e+00 : f32
    %10 = vector.broadcast %cst_8 : f32 to vector<256x128xf32>
    %11 = arith.maximumf %9, %10 : vector<256x128xf32>
    %12 = vector.shape_cast %11 : vector<256x128xf32> to vector<1x16x16x128xf32>
    %cst_9 = arith.constant 0.000000e+00 : f32
    %13 = vector.broadcast %cst_9 : f32 to vector<1x1x18x128xf32>
    %cst_10 = arith.constant 0.000000e+00 : f32
    %14 = vector.broadcast %cst_10 : f32 to vector<1x16x1x128xf32>
    %c0_11 = arith.constant 0 : index
    %c0_12 = arith.constant 0 : index
    %c7 = arith.constant 7 : index
    %c0_13 = arith.constant 0 : index
    %15 = vector.load %arg9[%c0_11, %c0_12, %c7, %c0_13] : memref<1x18x25x128xf32, #tpu.memory_space<vmem>>, vector<1x1x18x128xf32>
    tpu.vector_store %arg9[%c0_11, %c0_12, %c7, %c0_13], %13 {strides = array<i32>} : memref<1x18x25x128xf32, #tpu.memory_space<vmem>>, vector<1x1x18x128xf32>,
    %c0_14 = arith.constant 0 : index
    %c17 = arith.constant 17 : index
    %c7_15 = arith.constant 7 : index
    %c0_16 = arith.constant 0 : index
    %16 = vector.load %arg9[%c0_14, %c17, %c7_15, %c0_16] : memref<1x18x25x128xf32, #tpu.memory_space<vmem>>, vector<1x1x18x128xf32>
    tpu.vector_store %arg9[%c0_14, %c17, %c7_15, %c0_16], %13 {strides = array<i32>} : memref<1x18x25x128xf32, #tpu.memory_space<vmem>>, vector<1x1x18x128xf32>,
    %c0_17 = arith.constant 0 : index
    %c1 = arith.constant 1 : index
    %c7_18 = arith.constant 7 : index
    %c0_19 = arith.constant 0 : index
    %17 = vector.load %arg9[%c0_17, %c1, %c7_18, %c0_19] : memref<1x18x25x128xf32, #tpu.memory_space<vmem>>, vector<1x16x1x128xf32>
    tpu.vector_store %arg9[%c0_17, %c1, %c7_18, %c0_19], %14 {strides = array<i32>} : memref<1x18x25x128xf32, #tpu.memory_space<vmem>>, vector<1x16x1x128xf32>,
    %c0_20 = arith.constant 0 : index
    %c1_21 = arith.constant 1 : index
    %c24 = arith.constant 24 : index
    %c0_22 = arith.constant 0 : index
    %18 = vector.load %arg9[%c0_20, %c1_21, %c24, %c0_22] : memref<1x18x25x128xf32, #tpu.memory_space<vmem>>, vector<1x16x1x128xf32>
    tpu.vector_store %arg9[%c0_20, %c1_21, %c24, %c0_22], %14 {strides = array<i32>} : memref<1x18x25x128xf32, #tpu.memory_space<vmem>>, vector<1x16x1x128xf32>,
    %c0_23 = arith.constant 0 : index
    %c1_24 = arith.constant 1 : index
    %c8 = arith.constant 8 : index
    %c0_25 = arith.constant 0 : index
    %19 = vector.load %arg9[%c0_23, %c1_24, %c8, %c0_25] : memref<1x18x25x128xf32, #tpu.memory_space<vmem>>, vector<1x16x16x128xf32>
    tpu.vector_store %arg9[%c0_23, %c1_24, %c8, %c0_25], %12 {strides = array<i32>} : memref<1x18x25x128xf32, #tpu.memory_space<vmem>>, vector<1x16x16x128xf32>,
    %c0_26 = arith.constant 0 : index
    %c0_27 = arith.constant 0 : index
    %c0_28 = arith.constant 0 : index
    %20 = vector.load %arg4[%c0_26, %c0_27, %c0_28] : memref<3x3x128xf32, #tpu.memory_space<vmem>>, vector<1x1x128xf32>
    %21 = vector.shape_cast %20 : vector<1x1x128xf32> to vector<1x1x1x128xf32>
    %c0_29 = arith.constant 0 : index
    %c0_30 = arith.constant 0 : index
    %c7_31 = arith.constant 7 : index
    %c0_32 = arith.constant 0 : index
    %22 = vector.load %arg9[%c0_29, %c0_30, %c7_31, %c0_32] : memref<1x18x25x128xf32, #tpu.memory_space<vmem>>, vector<1x16x16x128xf32>
    %23 = vector.broadcast %21 : vector<1x1x1x128xf32> to vector<1x16x16x128xf32>
    %24 = arith.mulf %22, %23 : vector<1x16x16x128xf32>
    %c0_33 = arith.constant 0 : index
    %c1_34 = arith.constant 1 : index
    %c0_35 = arith.constant 0 : index
    %25 = vector.load %arg4[%c0_33, %c1_34, %c0_35] : memref<3x3x128xf32, #tpu.memory_space<vmem>>, vector<1x1x128xf32>
    %26 = vector.shape_cast %25 : vector<1x1x128xf32> to vector<1x1x1x128xf32>
    %c0_36 = arith.constant 0 : index
    %c0_37 = arith.constant 0 : index
    %c8_38 = arith.constant 8 : index
    %c0_39 = arith.constant 0 : index
    %27 = vector.load %arg9[%c0_36, %c0_37, %c8_38, %c0_39] : memref<1x18x25x128xf32, #tpu.memory_space<vmem>>, vector<1x16x16x128xf32>
    %28 = vector.broadcast %26 : vector<1x1x1x128xf32> to vector<1x16x16x128xf32>
    %29 = arith.mulf %27, %28 : vector<1x16x16x128xf32>
    %30 = arith.addf %24, %29 : vector<1x16x16x128xf32>
    %c0_40 = arith.constant 0 : index
    %c2 = arith.constant 2 : index
    %c0_41 = arith.constant 0 : index
    %31 = vector.load %arg4[%c0_40, %c2, %c0_41] : memref<3x3x128xf32, #tpu.memory_space<vmem>>, vector<1x1x128xf32>
    %32 = vector.shape_cast %31 : vector<1x1x128xf32> to vector<1x1x1x128xf32>
    %c0_42 = arith.constant 0 : index
    %c0_43 = arith.constant 0 : index
    %c9 = arith.constant 9 : index
    %c0_44 = arith.constant 0 : index
    %33 = vector.load %arg9[%c0_42, %c0_43, %c9, %c0_44] : memref<1x18x25x128xf32, #tpu.memory_space<vmem>>, vector<1x16x16x128xf32>
    %34 = vector.broadcast %32 : vector<1x1x1x128xf32> to vector<1x16x16x128xf32>
    %35 = arith.mulf %33, %34 : vector<1x16x16x128xf32>
    %36 = arith.addf %30, %35 : vector<1x16x16x128xf32>
    %c1_45 = arith.constant 1 : index
    %c0_46 = arith.constant 0 : index
    %c0_47 = arith.constant 0 : index
    %37 = vector.load %arg4[%c1_45, %c0_46, %c0_47] : memref<3x3x128xf32, #tpu.memory_space<vmem>>, vector<1x1x128xf32>
    %38 = vector.shape_cast %37 : vector<1x1x128xf32> to vector<1x1x1x128xf32>
    %c0_48 = arith.constant 0 : index
    %c1_49 = arith.constant 1 : index
    %c7_50 = arith.constant 7 : index
    %c0_51 = arith.constant 0 : index
    %39 = vector.load %arg9[%c0_48, %c1_49, %c7_50, %c0_51] : memref<1x18x25x128xf32, #tpu.memory_space<vmem>>, vector<1x16x16x128xf32>
    %40 = vector.broadcast %38 : vector<1x1x1x128xf32> to vector<1x16x16x128xf32>
    %41 = arith.mulf %39, %40 : vector<1x16x16x128xf32>
    %42 = arith.addf %36, %41 : vector<1x16x16x128xf32>
    %c1_52 = arith.constant 1 : index
    %c1_53 = arith.constant 1 : index
    %c0_54 = arith.constant 0 : index
    %43 = vector.load %arg4[%c1_52, %c1_53, %c0_54] : memref<3x3x128xf32, #tpu.memory_space<vmem>>, vector<1x1x128xf32>
    %44 = vector.shape_cast %43 : vector<1x1x128xf32> to vector<1x1x1x128xf32>
    %c0_55 = arith.constant 0 : index
    %c1_56 = arith.constant 1 : index
    %c8_57 = arith.constant 8 : index
    %c0_58 = arith.constant 0 : index
    %45 = vector.load %arg9[%c0_55, %c1_56, %c8_57, %c0_58] : memref<1x18x25x128xf32, #tpu.memory_space<vmem>>, vector<1x16x16x128xf32>
    %46 = vector.broadcast %44 : vector<1x1x1x128xf32> to vector<1x16x16x128xf32>
    %47 = arith.mulf %45, %46 : vector<1x16x16x128xf32>
    %48 = arith.addf %42, %47 : vector<1x16x16x128xf32>
    %c1_59 = arith.constant 1 : index
    %c2_60 = arith.constant 2 : index
    %c0_61 = arith.constant 0 : index
    %49 = vector.load %arg4[%c1_59, %c2_60, %c0_61] : memref<3x3x128xf32, #tpu.memory_space<vmem>>, vector<1x1x128xf32>
    %50 = vector.shape_cast %49 : vector<1x1x128xf32> to vector<1x1x1x128xf32>
    %c0_62 = arith.constant 0 : index
    %c1_63 = arith.constant 1 : index
    %c9_64 = arith.constant 9 : index
    %c0_65 = arith.constant 0 : index
    %51 = vector.load %arg9[%c0_62, %c1_63, %c9_64, %c0_65] : memref<1x18x25x128xf32, #tpu.memory_space<vmem>>, vector<1x16x16x128xf32>
    %52 = vector.broadcast %50 : vector<1x1x1x128xf32> to vector<1x16x16x128xf32>
    %53 = arith.mulf %51, %52 : vector<1x16x16x128xf32>
    %54 = arith.addf %48, %53 : vector<1x16x16x128xf32>
    %c2_66 = arith.constant 2 : index
    %c0_67 = arith.constant 0 : index
    %c0_68 = arith.constant 0 : index
    %55 = vector.load %arg4[%c2_66, %c0_67, %c0_68] : memref<3x3x128xf32, #tpu.memory_space<vmem>>, vector<1x1x128xf32>
    %56 = vector.shape_cast %55 : vector<1x1x128xf32> to vector<1x1x1x128xf32>
    %c0_69 = arith.constant 0 : index
    %c2_70 = arith.constant 2 : index
    %c7_71 = arith.constant 7 : index
    %c0_72 = arith.constant 0 : index
    %57 = vector.load %arg9[%c0_69, %c2_70, %c7_71, %c0_72] : memref<1x18x25x128xf32, #tpu.memory_space<vmem>>, vector<1x16x16x128xf32>
    %58 = vector.broadcast %56 : vector<1x1x1x128xf32> to vector<1x16x16x128xf32>
    %59 = arith.mulf %57, %58 : vector<1x16x16x128xf32>
    %60 = arith.addf %54, %59 : vector<1x16x16x128xf32>
    %c2_73 = arith.constant 2 : index
    %c1_74 = arith.constant 1 : index
    %c0_75 = arith.constant 0 : index
    %61 = vector.load %arg4[%c2_73, %c1_74, %c0_75] : memref<3x3x128xf32, #tpu.memory_space<vmem>>, vector<1x1x128xf32>
    %62 = vector.shape_cast %61 : vector<1x1x128xf32> to vector<1x1x1x128xf32>
    %c0_76 = arith.constant 0 : index
    %c2_77 = arith.constant 2 : index
    %c8_78 = arith.constant 8 : index
    %c0_79 = arith.constant 0 : index
    %63 = vector.load %arg9[%c0_76, %c2_77, %c8_78, %c0_79] : memref<1x18x25x128xf32, #tpu.memory_space<vmem>>, vector<1x16x16x128xf32>
    %64 = vector.broadcast %62 : vector<1x1x1x128xf32> to vector<1x16x16x128xf32>
    %65 = arith.mulf %63, %64 : vector<1x16x16x128xf32>
    %66 = arith.addf %60, %65 : vector<1x16x16x128xf32>
    %c2_80 = arith.constant 2 : index
    %c2_81 = arith.constant 2 : index
    %c0_82 = arith.constant 0 : index
    %67 = vector.load %arg4[%c2_80, %c2_81, %c0_82] : memref<3x3x128xf32, #tpu.memory_space<vmem>>, vector<1x1x128xf32>
    %68 = vector.shape_cast %67 : vector<1x1x128xf32> to vector<1x1x1x128xf32>
    %c0_83 = arith.constant 0 : index
    %c2_84 = arith.constant 2 : index
    %c9_85 = arith.constant 9 : index
    %c0_86 = arith.constant 0 : index
    %69 = vector.load %arg9[%c0_83, %c2_84, %c9_85, %c0_86] : memref<1x18x25x128xf32, #tpu.memory_space<vmem>>, vector<1x16x16x128xf32>
    %70 = vector.broadcast %68 : vector<1x1x1x128xf32> to vector<1x16x16x128xf32>
    %71 = arith.mulf %69, %70 : vector<1x16x16x128xf32>
    %72 = arith.addf %66, %71 : vector<1x16x16x128xf32>
    %73 = vector.shape_cast %72 : vector<1x16x16x128xf32> to vector<256x128xf32>
    %c0_87 = arith.constant 0 : index
    %c0_88 = arith.constant 0 : index
    %74 = vector.load %arg5[%c0_87, %c0_88] : memref<1x128xf32, #tpu.memory_space<vmem>>, vector<1x128xf32>
    %75 = vector.broadcast %74 : vector<1x128xf32> to vector<256x128xf32>
    %76 = arith.addf %73, %75 : vector<256x128xf32>
    %77 = arith.truncf %76 : vector<256x128xf32> to vector<256x128xbf16>
    %c0_89 = arith.constant 0 : index
    %c0_90 = arith.constant 0 : index
    %78 = vector.load %arg6[%c0_89, %c0_90] : memref<128x128xbf16, #tpu.memory_space<vmem>>, vector<128x128xbf16>
    %cst_91 = arith.constant dense<0.000000e+00> : vector<256x128xf32>
    %79 = tpu.matmul %77, %78, %cst_91 {dimension_numbers = #tpu.dot_dimension_numbers<[1], [0], [0], [1], [0, 0, 1, 1], [], []>} : vector<256x128xbf16>, vector<128x128xbf16>, vector<256x128xf32> -> vector<256x128xf32>
    %c0_92 = arith.constant 0 : index
    %c0_93 = arith.constant 0 : index
    %80 = vector.load %arg7[%c0_92, %c0_93] : memref<1x128xf32, #tpu.memory_space<vmem>>, vector<1x128xf32>
    %81 = vector.broadcast %80 : vector<1x128xf32> to vector<256x128xf32>
    %82 = arith.addf %79, %81 : vector<256x128xf32>
    %cst_94 = arith.constant 0.000000e+00 : f32
    %83 = vector.broadcast %cst_94 : f32 to vector<256x128xf32>
    %84 = arith.maximumf %82, %83 : vector<256x128xf32>
    %85 = vector.extract_strided_slice %84 {offsets = [0, 0], sizes = [256, 2], strides = [1, 1]} : vector<256x128xf32> to vector<256x2xf32>
    %86 = vector.shape_cast %85 : vector<256x2xf32> to vector<1x16x16x2xf32>
    %c0_95 = arith.constant 0 : index
    %c0_96 = arith.constant 0 : index
    %c0_97 = arith.constant 0 : index
    %c0_98 = arith.constant 0 : index
    %87 = vector.load %arg8[%c0_95, %c0_96, %c0_97, %c0_98] : memref<1x16x16x2xf32, #tpu.memory_space<vmem>>, vector<1x16x16x2xf32>
    tpu.vector_store %arg8[%c0_95, %c0_96, %c0_97, %c0_98], %86 {strides = array<i32>} : memref<1x16x16x2xf32, #tpu.memory_space<vmem>>, vector<1x16x16x2xf32>,
    return
  }
  func.func @transform_0(%arg0: i32) -> (i32, i32, i32, i32) {
    %c0_i32 = arith.constant 0 : i32
    %c0_i32_0 = arith.constant 0 : i32
    %c0_i32_1 = arith.constant 0 : i32
    %c0_i32_2 = arith.constant 0 : i32
    return %arg0, %c0_i32, %c0_i32_0, %c0_i32_1 : i32, i32, i32, i32
  }
  func.func @transform_1(%arg0: i32) -> (i32, i32) {
    %c0_i32 = arith.constant 0 : i32
    %c0_i32_0 = arith.constant 0 : i32
    %c0_i32_1 = arith.constant 0 : i32
    return %c0_i32, %c0_i32_0 : i32, i32
  }
  func.func @transform_2(%arg0: i32) -> (i32, i32) {
    %c0_i32 = arith.constant 0 : i32
    %c0_i32_0 = arith.constant 0 : i32
    %c0_i32_1 = arith.constant 0 : i32
    return %c0_i32, %c0_i32_0 : i32, i32
  }
  func.func @transform_3(%arg0: i32) -> (i32, i32, i32) {
    %c0_i32 = arith.constant 0 : i32
    %c0_i32_0 = arith.constant 0 : i32
    %c0_i32_1 = arith.constant 0 : i32
    %c0_i32_2 = arith.constant 0 : i32
    return %c0_i32, %c0_i32_0, %c0_i32_1 : i32, i32, i32
  }
  func.func @transform_4(%arg0: i32) -> (i32, i32) {
    %c0_i32 = arith.constant 0 : i32
    %c0_i32_0 = arith.constant 0 : i32
    %c0_i32_1 = arith.constant 0 : i32
    return %c0_i32, %c0_i32_0 : i32, i32
  }
  func.func @transform_5(%arg0: i32) -> (i32, i32) {
    %c0_i32 = arith.constant 0 : i32
    %c0_i32_0 = arith.constant 0 : i32
    %c0_i32_1 = arith.constant 0 : i32
    return %c0_i32, %c0_i32_0 : i32, i32
  }
  func.func @transform_6(%arg0: i32) -> (i32, i32) {
    %c0_i32 = arith.constant 0 : i32
    %c0_i32_0 = arith.constant 0 : i32
    %c0_i32_1 = arith.constant 0 : i32
    return %c0_i32, %c0_i32_0 : i32, i32
  }
  func.func @transform_7(%arg0: i32) -> (i32, i32, i32, i32) {
    %c0_i32 = arith.constant 0 : i32
    %c0_i32_0 = arith.constant 0 : i32
    %c0_i32_1 = arith.constant 0 : i32
    %c0_i32_2 = arith.constant 0 : i32
    return %arg0, %c0_i32, %c0_i32_0, %c0_i32_1 : i32, i32, i32, i32
  }
}

</mosaic_0001>

<bundles_post_ra>
// kernel: basic_block.1
= control target key start
LH: loop header
LB: loop body
LE: loop exit
PB: predicated region body
PF: predicated region fallthrough
CT: control target
= control target key end

     0   :  { %s2292_s24 = smov 0   ;;  %s3320_s0 = inlined_call_operand.vmem [shape: f32[2,16,16,2], index: 0, kind: input, shape index: {}]   ;;  %s3321_s1 = inlined_call_operand.vmem [shape: bf16[128,128], index: 1, kind: input, shape index: {}]   ;;  %s3322_s2 = inlined_call_operand.vmem [shape: f32[1,128], index: 2, kind: input, shape index: {}]   ;;  %s3323_s3 = inlined_call_operand.vmem [shape: f32[3,3,128], index: 3, kind: input, shape index: {}]   ;;  %s3324_s4 = inlined_call_operand.vmem [shape: f32[1,128], index: 4, kind: input, shape index: {}]   ;;  %s3325_s5 = inlined_call_operand.vmem [shape: bf16[128,128], index: 5, kind: input, shape index: {}]   ;;  %s3326_s6 = inlined_call_operand.vmem [shape: f32[1,128], index: 6, kind: input, shape index: {}]   ;;  %s3327_s7 = inlined_call_operand.vmem [shape: f32[2,16,16,2], index: 7, kind: output, shape index: {}]  }
   0x1 LB: > { %s2000_s25 = sadd.s32 4294967295, %s2249_s24   ;;  %p2004_p0 = scmp.ge.s32.totalorder %s2249_s24, 1  ;;  %s2249_s24 = sphi %s2292_s24, %s17_s24  }
   0x2   : > { %p237_p1 = scmp.lt.s32.totalorder %s2249_s24, 3 }
   0x4   : > { %p238_p2 = pnand %p2004_p0, %p237_p1 }
   0x5   : > { %v2216_v0 = vld [vmem:[%s3321_s1] sm:$0xff] (!%p238_p2)   ;;  %p269_p3 = scmp.lt.s32.totalorder (!%p238_p2), %s2000_s25, 1  ;;  %v2217_v1 = vld [vmem:[%s3321_s1 + $0x8] sm:$0xff] (!%p238_p2)   ;;  %v2218_v2 = vld [vmem:[%s3321_s1 + $0x10] sm:$0xff] (!%p238_p2)   ;;  %vm328_vm0 = vcmask (!%p238_p2), 15360   ;;  %v2251_v56 = vmov (!%p238_p2), 0.0  }
   0x6   : > { %241 = sbr.rel (%p238_p2) target bundleno = 648 (0x288), region = 48  ;;  %2111 = vmatprep.subr.bf16.mxu0 (!%p238_p2), %v2216_v0  ;;  %v2219_v3 = vld [vmem:[%s3321_s1 + $0x18] sm:$0xff] (!%p238_p2)   ;;  %v2220_v7 = vld [vmem:[%s3321_s1 + $0x20] sm:$0xff] (!%p238_p2)   ;;  %v2221_v8 = vld [vmem:[%s3321_s1 + $0x28] sm:$0xff] (!%p238_p2)   ;;  %642 = vst [vmem:[#allocation2 + $0x7] sm:$0xff] (!%p238_p2), %v2251_v56 }
   0x7   : > { %2112 = vmatpush3.bf16.msra.mxu0 (!%p238_p2), %v2216_v0  ;;  %v2222_v9 = vld [vmem:[%s3321_s1 + $0x30] sm:$0xff] (!%p238_p2)   ;;  %v2223_v10 = vld [vmem:[%s3321_s1 + $0x38] sm:$0xff] (!%p238_p2)   ;;  %643 = vst [vmem:[#allocation2 + $0xf] sm:$0xff] (!%p238_p2), %v2251_v56  ;;  %644 = vst [vmem:[#allocation2 + $0x17] sm:$0x3] (!%p238_p2), %v2251_v56 }
   0x8   : > { %2113 = vmatprep.subr.bf16.mxu0 (!%p238_p2), %v2217_v1  ;;  %650 = vst [vmem:[#allocation2 + $0x27] sm:$0x1] (!%p238_p2), %v2251_v56  ;;  %651 = vst [vmem:[#allocation2 + $0x47] sm:$0x1] (!%p238_p2), %v2251_v56  ;;  %v2224_v57 = vld [vmem:[%s3325_s5] sm:$0xff] (!%p238_p2)   ;;  %v2225_v58 = vld [vmem:[%s3325_s5 + $0x8] sm:$0xff] (!%p238_p2)  }
   0x9   : > { %666 = vst [vmem:[#allocation2 + $0x38] sm:$0x1] (!%p238_p2), %v2251_v56  ;;  %667 = vst [vmem:[#allocation2 + $0x58] sm:$0x1] (!%p238_p2), %v2251_v56  ;;  %2159 = vmatprep.subr.bf16.mxu1 (!%p238_p2), %v2224_v57  ;;  %v2226_v59 = vld [vmem:[%s3325_s5 + $0x10] sm:$0xff] (!%p238_p2)   ;;  %v2227_v60 = vld [vmem:[%s3325_s5 + $0x18] sm:$0xff] (!%p238_p2)  }
   0xa   : > { %646 = vst [vmem:[#allocation2 + $0x227] sm:$0xff] (!%p238_p2), %v2251_v56  ;;  %647 = vst [vmem:[#allocation2 + $0x22f] sm:$0xff] (!%p238_p2), %v2251_v56  ;;  %2160 = vmatpush3.bf16.msra.mxu1 (!%p238_p2), %v2224_v57  ;;  %v2228_v61 = vld [vmem:[%s3325_s5 + $0x20] sm:$0xff] (!%p238_p2)   ;;  %v2229_v62 = vld [vmem:[%s3325_s5 + $0x28] sm:$0xff] (!%p238_p2)  }
   0xb   : > { %2114 = vmatpush3.bf16.msra.mxu0 (!%p238_p2), %v2217_v1  ;;  %648 = vst [vmem:[#allocation2 + $0x237] sm:$0x3] (!%p238_p2), %v2251_v56  ;;  %652 = vst [vmem:[#allocation2 + $0x67] sm:$0x1] (!%p238_p2), %v2251_v56  ;;  %2161 = vmatprep.subr.bf16.mxu1 (!%p238_p2), %v2225_v58  ;;  %v2230_v63 = vld [vmem:[%s3325_s5 + $0x30] sm:$0xff] (!%p238_p2)   ;;  %v2231_v0 = vld [vmem:[%s3325_s5 + $0x38] sm:$0xff] (!%p238_p2)  }
   0xc   : > { %2115 = vmatprep.subr.bf16.mxu0 (!%p238_p2), %v2218_v2  ;;  %653 = vst [vmem:[#allocation2 + $0x87] sm:$0x1] (!%p238_p2), %v2251_v56  ;;  %654 = vst [vmem:[#allocation2 + $0xa7] sm:$0x1] (!%p238_p2), %v2251_v56  ;;  %v2409_v1 = vld [vmem:[%s3323_s3] ss:$0 sm:$0xff] (!%p238_p2) }
   0xd   : > { %s3329_s25 = smov (!%p269_p3, %s2000_s25), 1  ;;  %655 = vst [vmem:[#allocation2 + $0xc7] sm:$0x1] %v2251_v56  ;;  %656 = vst [vmem:[#allocation2 + $0xe7] sm:$0x1] %v2251_v56 }
   0xe   : > { %s2061_s9 = sshll.u32 %s3329_s25, 8  ;;  %657 = vst [vmem:[#allocation2 + $0x107] sm:$0x1] %v2251_v56  ;;  %658 = vst [vmem:[#allocation2 + $0x127] sm:$0x1] %v2251_v56  ;;  %2162 = vmatpush3.bf16.msra.mxu1 %v2225_v58 }
   0xf   : > { %s2317_s12 = scalar_lea.vmem %s3320_s0, %s2061_s9  ;;  %2116 = vmatpush3.bf16.msra.mxu0 %v2218_v2  ;;  %659 = vst [vmem:[#allocation2 + $0x147] sm:$0x1] %v2251_v56  ;;  %660 = vst [vmem:[#allocation2 + $0x167] sm:$0x1] %v2251_v56  ;;  %2163 = vmatprep.subr.bf16.mxu1 %v2226_v59  ;;  %v784_v2 = vld [vmem:[#allocation2 + $0x8] sm:$0xff]  ;;  %s3220_s27 = scalar_lea.vmem %s3327_s7, %s2061_s9 }
  0x10   : > { %v280_v4 = vld [vmem:[%s2317_s12] sm:$0xff]  ;;  %v281_v5 = vld [vmem:[%s2317_s12 + $0x8] sm:$0xff]  ;;  %2117 = vmatprep.subr.bf16.mxu0 %v2219_v3  ;;  %v282_v11 = vld [vmem:[%s2317_s12 + $0x10] sm:$0xff]  ;;  %661 = vst [vmem:[#allocation2 + $0x187] sm:$0x1] %v2251_v56 }
  0x11   : > { %v312_v6 = vpack.c.bf16 %v281_v5, %v280_v4  ;;  %v283_v12 = vld [vmem:[%s2317_s12 + $0x18] sm:$0xff]  ;;  %v284_v13 = vld [vmem:[%s2317_s12 + $0x20] sm:$0xff]  ;;  %v285_v14 = vld [vmem:[%s2317_s12 + $0x28] sm:$0xff]  ;;  %662 = vst [vmem:[#allocation2 + $0x1a7] sm:$0x1] %v2251_v56 }
  0x12   : > { %v313_v15 = vpack.c.bf16 %v283_v12, %v282_v11  ;;  %v314_v16 = vpack.c.bf16 %v285_v14, %v284_v13  ;;  %v286_v17 = vld [vmem:[%s2317_s12 + $0x30] sm:$0xff]  ;;  %v287_v18 = vld [vmem:[%s2317_s12 + $0x38] sm:$0xff]  ;;  %v288_v19 = vld [vmem:[%s2317_s12 + $0x40] sm:$0xff]  ;;  %663 = vst [vmem:[#allocation2 + $0x1c7] sm:$0x1] %v2251_v56  ;;  %2164 = vmatpush3.bf16.msra.mxu1 %v2226_v59 }
  0x13   : > { %2127 = vmatprep.mubr.msk.bf16.mxu0 %vm328_vm0, %v312_v6  ;;  %2118 = vmatpush3.bf16.msra.mxu0 %v2219_v3  ;;  %v289_v20 = vld [vmem:[%s2317_s12 + $0x48] sm:$0xff]  ;;  %v315_v21 = vpack.c.bf16 %v287_v18, %v286_v17  ;;  %v290_v23 = vld [vmem:[%s2317_s12 + $0x50] sm:$0xff]  ;;  %v291_v24 = vld [vmem:[%s2317_s12 + $0x58] sm:$0xff]  ;;  %664 = vst [vmem:[#allocation2 + $0x1e7] sm:$0x1] %v2251_v56  ;;  %v751_v6 = vmul.f32 0.0, %v2409_v1 }
  0x14   : > { %2119 = vmatprep.subr.bf16.mxu0 %v2220_v7  ;;  %v316_v22 = vpack.c.bf16 %v289_v20, %v288_v19  ;;  %v292_v25 = vld [vmem:[%s2317_s12 + $0x60] sm:$0xff]  ;;  %v293_v26 = vld [vmem:[%s2317_s12 + $0x68] sm:$0xff]  ;;  %v317_v27 = vpack.c.bf16 %v291_v24, %v290_v23  ;;  %v294_v29 = vld [vmem:[%s2317_s12 + $0x70] sm:$0xff]  ;;  %665 = vst [vmem:[#allocation2 + $0x207] sm:$0x1] %v2251_v56  ;;  %2165 = vmatprep.subr.bf16.mxu1 %v2227_v60 }
  0x15   : > { %v318_v28 = vpack.c.bf16 %v293_v26, %v292_v25  ;;  %v295_v30 = vld [vmem:[%s2317_s12 + $0x78] sm:$0xff]  ;;  %v296_v31 = vld [vmem:[%s2317_s12 + $0x80] sm:$0xff]  ;;  %v297_v32 = vld [vmem:[%s2317_s12 + $0x88] sm:$0xff]  ;;  %668 = vst [vmem:[#allocation2 + $0x78] sm:$0x1] %v2251_v56 }
  0x16   : > { %v319_v33 = vpack.c.bf16 %v295_v30, %v294_v29  ;;  %v320_v34 = vpack.c.bf16 %v297_v32, %v296_v31  ;;  %v298_v35 = vld [vmem:[%s2317_s12 + $0x90] sm:$0xff]  ;;  %v299_v36 = vld [vmem:[%s2317_s12 + $0x98] sm:$0xff]  ;;  %v300_v37 = vld [vmem:[%s2317_s12 + $0xa0] sm:$0xff]  ;;  %669 = vst [vmem:[#allocation2 + $0x98] sm:$0x1] %v2251_v56  ;;  %2166 = vmatpush3.bf16.msra.mxu1 %v2227_v60 }
  0x17   : > { %2120 = vmatpush3.bf16.msra.mxu0 %v2220_v7  ;;  %v301_v38 = vld [vmem:[%s2317_s12 + $0xa8] sm:$0xff]  ;;  %v321_v39 = vpack.c.bf16 %v299_v36, %v298_v35  ;;  %v302_v41 = vld [vmem:[%s2317_s12 + $0xb0] sm:$0xff]  ;;  %v303_v42 = vld [vmem:[%s2317_s12 + $0xb8] sm:$0xff]  ;;  %670 = vst [vmem:[#allocation2 + $0xb8] sm:$0x1] %v2251_v56  ;;  %2167 = vmatprep.subr.bf16.mxu1 %v2228_v61 }
  0x18   : > { %2121 = vmatprep.subr.bf16.mxu0 %v2221_v8  ;;  %v322_v40 = vpack.c.bf16 %v301_v38, %v300_v37  ;;  %v304_v43 = vld [vmem:[%s2317_s12 + $0xc0] sm:$0xff]  ;;  %v305_v44 = vld [vmem:[%s2317_s12 + $0xc8] sm:$0xff]  ;;  %v323_v45 = vpack.c.bf16 %v303_v42, %v302_v41  ;;  %v306_v47 = vld [vmem:[%s2317_s12 + $0xd0] sm:$0xff]  ;;  %671 = vst [vmem:[#allocation2 + $0xd8] sm:$0x1] %v2251_v56 }
  0x19   : > { %v324_v46 = vpack.c.bf16 %v305_v44, %v304_v43  ;;  %v307_v48 = vld [vmem:[%s2317_s12 + $0xd8] sm:$0xff]  ;;  %v308_v49 = vld [vmem:[%s2317_s12 + $0xe0] sm:$0xff]  ;;  %v309_v50 = vld [vmem:[%s2317_s12 + $0xe8] sm:$0xff]  ;;  %672 = vst [vmem:[#allocation2 + $0xf8] sm:$0x1] %v2251_v56 }
  0x1a   : > { %v325_v51 = vpack.c.bf16 %v307_v48, %v306_v47  ;;  %v326_v52 = vpack.c.bf16 %v309_v50, %v308_v49  ;;  %v310_v53 = vld [vmem:[%s2317_s12 + $0xf0] sm:$0xff]  ;;  %v311_v54 = vld [vmem:[%s2317_s12 + $0xf8] sm:$0xff]  ;;  %673 = vst [vmem:[#allocation2 + $0x118] sm:$0x1] %v2251_v56  ;;  %674 = vst [vmem:[#allocation2 + $0x138] sm:$0x1] %v2251_v56  ;;  %2168 = vmatpush3.bf16.msra.mxu1 %v2228_v61 }
  0x1b   : > { %2122 = vmatpush3.bf16.msra.mxu0 %v2221_v8  ;;  %v327_v55 = vpack.c.bf16 %v311_v54, %v310_v53  ;;  %675 = vst [vmem:[#allocation2 + $0x158] sm:$0x1] %v2251_v56  ;;  %676 = vst [vmem:[#allocation2 + $0x178] sm:$0x1] %v2251_v56  ;;  %2169 = vmatprep.subr.bf16.mxu1 %v2229_v62  ;;  %v785_v3 = vld [vmem:[#allocation2 + $0x10] sm:$0xff] }
  0x1c   : > { %2123 = vmatprep.subr.bf16.mxu0 %v2222_v9  ;;  %677 = vst [vmem:[#allocation2 + $0x198] sm:$0x1] %v2251_v56  ;;  %678 = vst [vmem:[#allocation2 + $0x1b8] sm:$0x1] %v2251_v56  ;;  %v2414_v4 = vld [vmem:[%s3322_s2] ss:$0 sm:$0xff] }
  0x1d   : > { %679 = vst [vmem:[#allocation2 + $0x1d8] sm:$0x1] %v2251_v56  ;;  %680 = vst [vmem:[#allocation2 + $0x1f8] sm:$0x1] %v2251_v56  ;;  %v2419_v5 = vld [vmem:[%s3323_s3 + $0x1] ss:$0 sm:$0xff] }
  0x1e   : > { %681 = vst [vmem:[#allocation2 + $0x218] sm:$0x1] %v2251_v56  ;;  %2170 = vmatpush3.bf16.msra.mxu1 %v2229_v62  ;;  %v820_v7 = vmul.f32 %v2419_v5, %v784_v2  ;;  %v885_v11 = vld [vmem:[#allocation2 + $0x9] sm:$0xff]  ;;  %v886_v14 = vld [vmem:[#allocation2 + $0x11] sm:$0xff]  ;;  %v2465_v42 = vld [vmem:[%s3323_s3 + $0x8] ss:$0 sm:$0xff] }
  0x1f   : > { %2124 = vmatpush3.bf16.msra.mxu0 %v2222_v9  ;;  %2171 = vmatprep.subr.bf16.mxu1 %v2230_v63  ;;  %v821_v9 = vmul.f32 %v2419_v5, %v785_v3  ;;  %v2443_v29 = vld [vmem:[%s3323_s3 + $0x9] ss:$0 sm:$0xff]  ;;  %v2487_v54 = vld [vmem:[%s3323_s3 + $0xa] ss:$0 sm:$0xff]  ;;  %v2496_v58 = vld [vmem:[%s3323_s3 + $0x6] ss:$0 sm:$0xff] }
  0x20   : > { %2125 = vmatprep.subr.bf16.mxu0 %v2223_v10  ;;  %v852_v20 = vadd.f32 %v820_v7, %v751_v6 }
  0x21   : > { %v853_v24 = vadd.f32 %v821_v9, %v751_v6 }
  0x22   : > { %2172 = vmatpush3.bf16.msra.mxu1 %v2230_v63 }
  0x23   : > { %2126 = vmatpush3.bf16.msra.mxu0 %v2223_v10  ;;  %2173 = vmatprep.subr.bf16.mxu1 %v2231_v0  ;;  %v2427_v10 = vld [vmem:[%s3323_s3 + $0x2] ss:$0 sm:$0xff] }
  0x24   : > { %v922_v25 = vmul.f32 %v2427_v10, %v886_v14 }
  0x26   : > { %2128 = vmatmul.mubr.msk.bf16.vlgmr.msra.gmra.mrb[0].mxu0 %vm328_vm0, %v313_v15  ;;  %2174 = vmatpush3.bf16.msra.mxu1 %v2231_v0  ;;  %v954_v32 = vadd.f32 %v922_v25, %v853_v24 }
  0x27   : > { %2131 = vmatprep.mubr.msk.bf16.mxu0 %vm328_vm0, %v314_v16 }
  0x2e   : > { %2132 = vmatmul.mubr.msk.bf16.gmra.mrb[4].mxu0 %vm328_vm0, %v315_v21  ;;  %v921_v21 = vmul.f32 %v2427_v10, %v885_v11 }
  0x2f   : > { %2135 = vmatprep.mubr.msk.bf16.mxu0 %vm328_vm0, %v316_v22 }
  0x30   : > { %v953_v31 = vadd.f32 %v921_v21, %v852_v20 }
  0x36   : > { %2136 = vmatmul.mubr.msk.bf16.gmra.mrb[8].mxu0 %vm328_vm0, %v317_v27 }
  0x37   : > { %2139 = vmatprep.mubr.msk.bf16.mxu0 %vm328_vm0, %v318_v28  ;;  %v2438_v28 = vld [vmem:[%s3323_s3 + $0x5] ss:$0 sm:$0xff] }
  0x3e   : > { %2140 = vmatmul.mubr.msk.bf16.gmra.mrb[12].mxu0 %vm328_vm0, %v319_v33 }
  0x3f   : > { %2143 = vmatprep.mubr.msk.bf16.mxu0 %vm328_vm0, %v320_v34 }
  0x46   : > { %2144 = vmatmul.mubr.msk.bf16.gmra.mrb[16].mxu0 %vm328_vm0, %v321_v39 }
  0x47   : > { %2147 = vmatprep.mubr.msk.bf16.mxu0 %vm328_vm0, %v322_v40  ;;  %v2459_v40 = vld [vmem:[%s3323_s3 + $0x4] ss:$0 sm:$0xff] }
  0x4e   : > { %2148 = vmatmul.mubr.msk.bf16.gmra.mrb[20].mxu0 %vm328_vm0, %v323_v45 }
  0x4f   : > { %2151 = vmatprep.mubr.msk.bf16.mxu0 %vm328_vm0, %v324_v46 }
  0x56   : > { %2152 = vmatmul.mubr.msk.bf16.gmra.mrb[24].mxu0 %vm328_vm0, %v325_v51 }
  0x57   : > { %2155 = vmatprep.mubr.msk.bf16.mxu0 %vm328_vm0, %v326_v52 }
  0x5e   : > { %2156 = vmatmul.mubr.msk.bf16.gmra.mrb[28].mxu0 %vm328_vm0, %v327_v55 }
  0xf9   : > { %v2129_v8 = vpop.f32.mrb[0].mxu0 }
  0xfa   : > { %v492_v12 = vadd.f32 %v2129_v8, %v2414_v4  ;;  %v483_v13 = vpop.f32.mrb[1].mxu0 }
  0xfb   : > { %v484_v15 = vadd.f32 %v2414_v4, %v483_v13  ;;  %v2130_v16 = vpop.f32.mrb[2].mxu0 }
  0xfc   : > { %v612_v17 = vmax.f32 %v492_v12, 0.0  ;;  %v495_v18 = vadd.f32 %v2130_v16, %v2414_v4  ;;  %v486_v19 = vpop.f32.mrb[3].mxu0 }
  0xfd   : > { %v610_v22 = vmax.f32 %v484_v15, 0.0  ;;  %v487_v23 = vadd.f32 %v2414_v4, %v486_v19 }
  0xfe   : > { %684 = vst [vmem:[#allocation2 + $0x48] sm:$0xff] %v612_v17  ;;  %v613_v26 = vmax.f32 %v495_v18, 0.0  ;;  %v2447_v35 = vmul.f32 %v2443_v29, %v612_v17  ;;  %v2450_v36 = vmul.f32 %v2438_v28, %v612_v17  ;;  %v2453_v37 = vmul.f32 %v2419_v5, %v612_v17 }
  0xff   : > { %682 = vst [vmem:[#allocation2 + $0x28] sm:$0xff] %v610_v22  ;;  %v611_v27 = vmax.f32 %v487_v23, 0.0  ;;  %v1124_v41 = vmul.f32 %v2438_v28, %v610_v22  ;;  %v822_v44 = vmul.f32 %v2419_v5, %v610_v22 }
 0x100   : > { %685 = vst [vmem:[#allocation2 + $0x50] sm:$0xff] %v613_v26  ;;  %v2468_v43 = vmul.f32 %v2443_v29, %v613_v26  ;;  %v2475_v48 = vmul.f32 %v2438_v28, %v613_v26  ;;  %v2478_v49 = vmul.f32 %v2419_v5, %v613_v26 }
 0x101   : > { %683 = vst [vmem:[#allocation2 + $0x30] sm:$0xff] %v611_v27  ;;  %v2133_v30 = vpop.f32.mrb[4].mxu0  ;;  %v1125_v52 = vmul.f32 %v2438_v28, %v611_v27  ;;  %v823_v55 = vmul.f32 %v2419_v5, %v611_v27 }
 0x102   : > { %v508_v33 = vadd.f32 %v2133_v30, %v2414_v4  ;;  %v499_v34 = vpop.f32.mrb[5].mxu0 }
 0x103   : > { %v500_v38 = vadd.f32 %v2414_v4, %v499_v34  ;;  %v2134_v39 = vpop.f32.mrb[6].mxu0 }
 0x104   : > { %v2471_v45 = vmax.f32 %v508_v33, 0.0  ;;  %v511_v46 = vadd.f32 %v2134_v39, %v2414_v4  ;;  %v502_v47 = vpop.f32.mrb[7].mxu0 }
 0x105   : > { %v2480_v50 = vmax.f32 %v500_v38, 0.0  ;;  %v503_v51 = vadd.f32 %v2414_v4, %v502_v47  ;;  %v1292_v53 = vld [vmem:[#allocation2 + $0x47] sm:$0xff] }
 0x106   : > { %688 = vst [vmem:[#allocation2 + $0x88] sm:$0xff] %v2471_v45  ;;  %v2491_v56 = vmax.f32 %v511_v46, 0.0  ;;  %v987_v57 = vld [vmem:[#allocation2 + $0x27] sm:$0xff]  ;;  %v1328_v59 = vmul.f32 %v2465_v42, %v1292_v53  ;;  %v1025_v60 = vmul.f32 %v2459_v40, %v1292_v53  ;;  %v2501_v61 = vmul.f32 %v2409_v1, %v1292_v53 }
 0x107   : > { %686 = vst [vmem:[#allocation2 + $0x68] sm:$0xff] %v2480_v50  ;;  %v2504_v62 = vmax.f32 %v503_v51, 0.0  ;;  %v1023_v63 = vmul.f32 %v2459_v40, %v987_v57  ;;  %v2507_v0 = vld [vmem:[#allocation2 + $0x4f] sm:$0xff]  ;;  %v753_v6 = vmul.f32 %v2409_v1, %v987_v57  ;;  %v2516_v7 = vmul.f32 %v2443_v29, %v2480_v50 }
 0x108   : > { %v2509_v2 = vld [vmem:[#allocation2 + $0x49] sm:$0xff]  ;;  %v2511_v3 = vld [vmem:[#allocation2 + $0x51] sm:$0xff]  ;;  %689 = vst [vmem:[#allocation2 + $0x90] sm:$0xff] %v2491_v56  ;;  %v1329_v12 = vmul.f32 %v2465_v42, %v2507_v0  ;;  %v1026_v15 = vmul.f32 %v2459_v40, %v2507_v0 }
 0x109   : > { %v988_v8 = vld [vmem:[#allocation2 + $0x2f] sm:$0xff]  ;;  %v1530_v13 = vmul.f32 %v2487_v54, %v2509_v2  ;;  %v2525_v14 = vmul.f32 %v2487_v54, %v2511_v3  ;;  %687 = vst [vmem:[#allocation2 + $0x70] sm:$0xff] %v2504_v62  ;;  %v2137_v16 = vpop.f32.mrb[8].mxu0  ;;  %v1055_v18 = vadd.f32 %v1023_v63, %v953_v31  ;;  %v854_v24 = vadd.f32 %v822_v44, %v753_v6 }
 0x10a   : > { %v1189_v9 = vld [vmem:[#allocation2 + $0x29] sm:$0xff]  ;;  %v1190_v11 = vld [vmem:[#allocation2 + $0x31] sm:$0xff]  ;;  %v1024_v17 = vmul.f32 %v2459_v40, %v988_v8  ;;  %v524_v21 = vadd.f32 %v2137_v16, %v2414_v4  ;;  %v515_v22 = vpop.f32.mrb[9].mxu0  ;;  %v754_v23 = vmul.f32 %v2409_v1, %v988_v8  ;;  %v1227_v6 = vmul.f32 %v2496_v58, %v2509_v2 }
 0x10b   : > { %v1225_v19 = vmul.f32 %v2496_v58, %v1189_v9  ;;  %v1226_v20 = vmul.f32 %v2496_v58, %v1190_v11  ;;  %v923_v25 = vmul.f32 %v2427_v10, %v1189_v9  ;;  %v516_v26 = vadd.f32 %v2414_v4, %v515_v22  ;;  %v2138_v27 = vpop.f32.mrb[10].mxu0 }
 0x10c   : > { %v1056_v30 = vadd.f32 %v1024_v17, %v954_v32  ;;  %v1156_v33 = vadd.f32 %v1124_v41, %v1055_v18  ;;  %v924_v34 = vmul.f32 %v2427_v10, %v1190_v11  ;;  %v2538_v31 = vmax.f32 %v524_v21, 0.0  ;;  %v518_v39 = vpop.f32.mrb[11].mxu0 }
 0x10d   : > { %v527_v38 = vadd.f32 %v2138_v27, %v2414_v4  ;;  %v855_v46 = vadd.f32 %v823_v55, %v754_v23  ;;  %v955_v47 = vadd.f32 %v923_v25, %v854_v24  ;;  %v2541_v51 = vmax.f32 %v516_v26, 0.0  ;;  %v2578_v26 = vld [vmem:[%s3324_s4] ss:$0 sm:$0xff] }
 0x10e   : > { %v519_v44 = vadd.f32 %v2414_v4, %v518_v39  ;;  %v1157_v53 = vadd.f32 %v1125_v52, %v1056_v30  ;;  %v1257_v57 = vadd.f32 %v1225_v19, %v1156_v33  ;;  %692 = vst [vmem:[#allocation2 + $0xc8] sm:$0xff] %v2538_v31  ;;  %v2549_v8 = vld [vmem:[#allocation2 + $0x67] sm:$0xff]  ;;  %v1228_v52 = vmul.f32 %v2496_v58, %v2511_v3 }
 0x10f   : > { %v2545_v63 = vmax.f32 %v527_v38, 0.0  ;;  %v956_v32 = vadd.f32 %v924_v34, %v855_v46  ;;  %v1057_v41 = vadd.f32 %v1025_v60, %v955_v47  ;;  %690 = vst [vmem:[#allocation2 + $0xa8] sm:$0xff] %v2541_v51  ;;  %v1330_v18 = vmul.f32 %v2465_v42, %v2549_v8 }
 0x110   : > { %v2552_v55 = vmax.f32 %v519_v44, 0.0  ;;  %v1258_v9 = vadd.f32 %v1226_v20, %v1157_v53  ;;  %v1360_v11 = vadd.f32 %v1328_v59, %v1257_v57  ;;  %v2558_v60 = vld [vmem:[#allocation2 + $0x6f] sm:$0xff]  ;;  %v1432_v19 = vmul.f32 %v2443_v29, %v2504_v62 }
 0x111   : > { %693 = vst [vmem:[#allocation2 + $0xd0] sm:$0xff] %v2545_v63  ;;  %v1058_v16 = vadd.f32 %v1026_v15, %v956_v32  ;;  %v1158_v17 = vadd.f32 %v2450_v36, %v1057_v41  ;;  %v2564_v21 = vld [vmem:[#allocation2 + $0x69] sm:$0xff]  ;;  %v2566_v20 = vld [vmem:[#allocation2 + $0x71] sm:$0xff]  ;;  %v2141_v59 = vpop.f32.mrb[12].mxu0  ;;  %v1331_v36 = vmul.f32 %v2465_v42, %v2558_v60  ;;  %v756_v39 = vmul.f32 %v2409_v1, %v2507_v0 }
 0x112   : > { %691 = vst [vmem:[#allocation2 + $0xb0] sm:$0xff] %v2552_v55  ;;  %v1361_v22 = vadd.f32 %v1329_v12, %v1258_v9  ;;  %v1461_v15 = vadd.f32 %v2447_v35, %v1360_v11  ;;  %v1532_v23 = vmul.f32 %v2487_v54, %v2564_v21  ;;  %v540_v24 = vadd.f32 %v2141_v59, %v2414_v4  ;;  %v531_v25 = vpop.f32.mrb[13].mxu0 }
 0x113   : > { %v1159_v27 = vadd.f32 %v2475_v48, %v1058_v16  ;;  %v1259_v30 = vadd.f32 %v1227_v6, %v1158_v17  ;;  %v1533_v35 = vmul.f32 %v2487_v54, %v2566_v20  ;;  %v532_v12 = vadd.f32 %v2414_v4, %v531_v25  ;;  %v2142_v33 = vpop.f32.mrb[14].mxu0 }
 0x114   : > { %v1462_v34 = vadd.f32 %v2468_v43, %v1361_v22  ;;  %v1562_v38 = vadd.f32 %v1530_v13, %v1461_v15  ;;  %v624_v46 = vmax.f32 %v540_v24, 0.0  ;;  %v2588_v47 = vadd.f32 %v2142_v33, %v2414_v4  ;;  %v534_v44 = vpop.f32.mrb[15].mxu0  ;;  %v2624_v33 = vld [vmem:[#allocation2 + $0x87] sm:$0xff] }
 0x115   : > { %v1260_v53 = vadd.f32 %v1228_v52, %v1159_v27  ;;  %v1362_v48 = vadd.f32 %v1330_v18, %v1259_v30  ;;  %v2590_v57 = vmax.f32 %v532_v12, 0.0  ;;  %v535_v32 = vadd.f32 %v2414_v4, %v534_v44  ;;  %v2628_v44 = vld [vmem:[#allocation2 + $0x8f] sm:$0xff] }
 0x116   : > { %v1563_v41 = vadd.f32 %v2525_v14, %v1462_v34  ;;  %v1601_v6 = vadd.f32 %v2578_v26, %v1562_v38  ;;  %696 = vst [vmem:[#allocation2 + $0x108] sm:$0xff] %v624_v46  ;;  %v625_v43 = vmax.f32 %v2588_v47, 0.0  ;;  %v856_v9 = vadd.f32 %v2453_v37, %v2501_v61 }
 0x117   : > { %v1363_v13 = vadd.f32 %v1331_v36, %v1260_v53  ;;  %v1463_v0 = vadd.f32 %v2516_v7, %v1362_v48  ;;  %694 = vst [vmem:[#allocation2 + $0xe8] sm:$0xff] %v2590_v57  ;;  %v2600_v11 = vmax.f32 %v535_v32, 0.0  ;;  %v857_v16 = vadd.f32 %v2478_v49, %v756_v39 }
 0x118   : > { %v1602_v52 = vadd.f32 %v2578_v26, %v1563_v41  ;;  %v925_v14 = vmul.f32 %v2427_v10, %v2509_v2  ;;  %697 = vst [vmem:[#allocation2 + $0x110] sm:$0xff] %v625_v43  ;;  %v926_v7 = vmul.f32 %v2427_v10, %v2511_v3  ;;  %v1027_v37 = vmul.f32 %v2459_v40, %v2549_v8 }
 0x119   : > { %v1464_v17 = vadd.f32 %v1432_v19, %v1363_v13  ;;  %v1564_v18 = vadd.f32 %v1532_v23, %v1463_v0  ;;  %695 = vst [vmem:[#allocation2 + $0xf0] sm:$0xff] %v2600_v11  ;;  %v2145_v61 = vpop.f32.mrb[16].mxu0  ;;  %v1028_v49 = vmul.f32 %v2459_v40, %v2558_v60  ;;  %v1128_v2 = vmul.f32 %v2438_v28, %v2480_v50  ;;  %v2635_v13 = vld [vmem:[#allocation2 + $0x91] sm:$0xff] }
 0x11a   : > { %v1633_v59 = vpack.c.bf16 %v1602_v52, %v1601_v6  ;;  %v957_v22 = vadd.f32 %v925_v14, %v856_v9  ;;  %v556_v19 = vadd.f32 %v2145_v61, %v2414_v4  ;;  %v547_v15 = vpop.f32.mrb[17].mxu0  ;;  %v958_v23 = vadd.f32 %v926_v7, %v857_v16  ;;  %v2633_v6 = vld [vmem:[#allocation2 + $0x89] sm:$0xff] }
 0x11b   : > { %v1565_v36 = vadd.f32 %v1533_v35, %v1464_v17  ;;  %v1603_v3 = vadd.f32 %v2578_v26, %v1564_v18  ;;  %v548_v24 = vadd.f32 %v2414_v4, %v547_v15  ;;  %v2146_v25 = vpop.f32.mrb[18].mxu0  ;;  %v1129_v30 = vmul.f32 %v2438_v28, %v2504_v62 }
 0x11c   : > { %2175 = vmatprep.mubr.bf16.mxu1 %v1633_v59  ;;  %v1059_v27 = vadd.f32 %v1027_v37, %v957_v22  ;;  %v1229_v12 = vmul.f32 %v2496_v58, %v2564_v21  ;;  %v628_v34 = vmax.f32 %v556_v19, 0.0  ;;  %v559_v38 = vadd.f32 %v2146_v25, %v2414_v4  ;;  %v550_v35 = vpop.f32.mrb[19].mxu0 }
 0x11d   : > { %v1604_v39 = vadd.f32 %v2578_v26, %v1565_v36  ;;  %v1060_v46 = vadd.f32 %v1028_v49, %v958_v23  ;;  %v626_v53 = vmax.f32 %v548_v24, 0.0  ;;  %v551_v48 = vadd.f32 %v2414_v4, %v550_v35 }
 0x11e   : > { %v1160_v32 = vadd.f32 %v1128_v2, %v1059_v27  ;;  %v1230_v41 = vmul.f32 %v2496_v58, %v2566_v20  ;;  %700 = vst [vmem:[#allocation2 + $0x148] sm:$0xff] %v628_v34  ;;  %v629_v0 = vmax.f32 %v559_v38, 0.0  ;;  %v1332_v16 = vmul.f32 %v2465_v42, %v2624_v33 }
 0x11f   : > { %v1634_v9 = vpack.c.bf16 %v1604_v39, %v1603_v3  ;;  %v1161_v52 = vadd.f32 %v1129_v30, %v1060_v46  ;;  %698 = vst [vmem:[#allocation2 + $0x128] sm:$0xff] %v626_v53  ;;  %v2639_v14 = vmax.f32 %v551_v48, 0.0  ;;  %v1333_v18 = vmul.f32 %v2465_v42, %v2628_v44 }
 0x120   : > { %v1261_v17 = vadd.f32 %v1229_v12, %v1160_v32  ;;  %v1433_v7 = vmul.f32 %v2443_v29, %v2471_v45  ;;  %701 = vst [vmem:[#allocation2 + $0x150] sm:$0xff] %v629_v0  ;;  %v1434_v61 = vmul.f32 %v2443_v29, %v2491_v56  ;;  %v1534_v59 = vmul.f32 %v2487_v54, %v2633_v6 }
 0x121   : > { %2176 = vmatmul.mubr.bf16.vlgmr.msra.gmra.mrb[0].mxu1 %v1634_v9  ;;  %v1262_v37 = vadd.f32 %v1230_v41, %v1161_v52  ;;  %v1535_v22 = vmul.f32 %v2487_v54, %v2635_v13  ;;  %699 = vst [vmem:[#allocation2 + $0x130] sm:$0xff] %v2639_v14  ;;  %v2149_v49 = vpop.f32.mrb[20].mxu0  ;;  %v757_v19 = vmul.f32 %v2409_v1, %v2549_v8 }
 0x122   : > { %v1364_v2 = vadd.f32 %v1332_v16, %v1261_v17  ;;  %v758_v15 = vmul.f32 %v2409_v1, %v2558_v60  ;;  %v826_v36 = vmul.f32 %v2419_v5, %v2480_v50  ;;  %v572_v3 = vadd.f32 %v2149_v49, %v2414_v4  ;;  %v563_v23 = vpop.f32.mrb[21].mxu0 }
 0x123   : > { %v1365_v24 = vadd.f32 %v1333_v18, %v1262_v37  ;;  %v827_v25 = vmul.f32 %v2419_v5, %v2504_v62  ;;  %v927_v27 = vmul.f32 %v2427_v10, %v2564_v21  ;;  %v564_v30 = vadd.f32 %v2414_v4, %v563_v23  ;;  %v2150_v12 = vpop.f32.mrb[22].mxu0  ;;  %v2680_v18 = vld [vmem:[#allocation2 + $0xaf] sm:$0xff] }
 0x124   : > { %v1465_v8 = vadd.f32 %v1433_v7, %v1364_v2  ;;  %v858_v34 = vadd.f32 %v826_v36, %v757_v19  ;;  %v928_v60 = vmul.f32 %v2427_v10, %v2566_v20  ;;  %v632_v38 = vmax.f32 %v572_v3, 0.0  ;;  %v566_v39 = vpop.f32.mrb[23].mxu0  ;;  %v2672_v20 = vld [vmem:[#allocation2 + $0xa7] sm:$0xff] }
 0x125   : > { %v575_v50 = vadd.f32 %v2150_v12, %v2414_v4  ;;  %v1466_v35 = vadd.f32 %v1434_v61, %v1365_v24  ;;  %v859_v46 = vadd.f32 %v827_v25, %v758_v15  ;;  %v2667_v53 = vmax.f32 %v564_v30, 0.0 }
 0x126   : > { %v1566_v62 = vadd.f32 %v1534_v59, %v1465_v8  ;;  %v567_v48 = vadd.f32 %v2414_v4, %v566_v39  ;;  %v959_v21 = vadd.f32 %v927_v27, %v858_v34  ;;  %704 = vst [vmem:[#allocation2 + $0x188] sm:$0xff] %v632_v38  ;;  %v1029_v9 = vmul.f32 %v2459_v40, %v2624_v33 }
 0x127   : > { %v633_v32 = vmax.f32 %v575_v50, 0.0  ;;  %v1567_v41 = vadd.f32 %v1535_v22, %v1466_v35  ;;  %v960_v0 = vadd.f32 %v928_v60, %v859_v46  ;;  %702 = vst [vmem:[#allocation2 + $0x168] sm:$0xff] %v2667_v53  ;;  %v1030_v17 = vmul.f32 %v2459_v40, %v2628_v44  ;;  %v2687_v22 = vld [vmem:[#allocation2 + $0xa9] sm:$0xff] }
 0x128   : > { %v1605_v52 = vadd.f32 %v2578_v26, %v1566_v62  ;;  %v2676_v16 = vmax.f32 %v567_v48, 0.0  ;;  %v1061_v37 = vadd.f32 %v1029_v9, %v959_v21  ;;  %v1130_v61 = vmul.f32 %v2438_v28, %v2471_v45 }
 0x129   : > { %705 = vst [vmem:[#allocation2 + $0x190] sm:$0xff] %v633_v32  ;;  %v1606_v7 = vadd.f32 %v2578_v26, %v1567_v41  ;;  %v1131_v59 = vmul.f32 %v2438_v28, %v2491_v56  ;;  %v1062_v49 = vadd.f32 %v1030_v17, %v960_v0  ;;  %v1231_v2 = vmul.f32 %v2496_v58, %v2633_v6  ;;  %v2153_v36 = vpop.f32.mrb[24].mxu0  ;;  %v1501_v0 = vld [vmem:[#allocation2 + $0xb1] sm:$0xff] }
 0x12a   : > { %703 = vst [vmem:[#allocation2 + $0x170] sm:$0xff] %v2676_v16  ;;  %v1232_v19 = vmul.f32 %v2496_v58, %v2635_v13  ;;  %v1334_v15 = vmul.f32 %v2465_v42, %v2672_v20  ;;  %v1162_v23 = vadd.f32 %v1130_v61, %v1061_v37  ;;  %v1335_v24 = vmul.f32 %v2465_v42, %v2680_v18  ;;  %v579_v27 = vpop.f32.mrb[25].mxu0 }
 0x12b   : > { %v1635_v3 = vpack.c.bf16 %v1606_v7, %v1605_v52  ;;  %v1435_v25 = vmul.f32 %v2443_v29, %v2541_v51  ;;  %v1163_v30 = vadd.f32 %v1131_v59, %v1062_v49  ;;  %v1436_v12 = vmul.f32 %v2443_v29, %v2552_v55  ;;  %v2154_v60 = vpop.f32.mrb[26].mxu0  ;;  %v2731_v49 = vld [vmem:[#allocation2 + $0xc7] sm:$0xff] }
 0x12c   : > { %v1536_v8 = vmul.f32 %v2487_v54, %v2687_v22  ;;  %v588_v34 = vadd.f32 %v2153_v36, %v2414_v4  ;;  %v1263_v38 = vadd.f32 %v1231_v2, %v1162_v23  ;;  %v580_v50 = vadd.f32 %v2414_v4, %v579_v27  ;;  %v582_v46 = vpop.f32.mrb[27].mxu0  ;;  %v2744_v27 = vld [vmem:[#allocation2 + $0xc9] sm:$0xff] }
 0x12d   : > { %2179 = vmatprep.mubr.bf16.mxu1 %v1635_v3  ;;  %v2707_v35 = vadd.f32 %v2154_v60, %v2414_v4  ;;  %v759_v39 = vmul.f32 %v2409_v1, %v2624_v33  ;;  %v1264_v62 = vadd.f32 %v1232_v19, %v1163_v30  ;;  %v760_v21 = vmul.f32 %v2409_v1, %v2628_v44 }
 0x12e   : > { %v636_v48 = vmax.f32 %v588_v34, 0.0  ;;  %v828_v32 = vmul.f32 %v2419_v5, %v2471_v45  ;;  %v1366_v41 = vadd.f32 %v1334_v15, %v1263_v38  ;;  %v2715_v9 = vmax.f32 %v580_v50, 0.0  ;;  %v2736_v15 = vld [vmem:[#allocation2 + $0xcf] sm:$0xff] }
 0x12f   : > { %v637_v52 = vmax.f32 %v2707_v35, 0.0  ;;  %v829_v17 = vmul.f32 %v2419_v5, %v2491_v56  ;;  %v1367_v7 = vadd.f32 %v1335_v24, %v1264_v62  ;;  %v929_v37 = vmul.f32 %v2427_v10, %v2633_v6 }
 0x130   : > { %708 = vst [vmem:[#allocation2 + $0x1c8] sm:$0xff] %v636_v48  ;;  %v860_v33 = vadd.f32 %v828_v32, %v759_v39  ;;  %v930_v44 = vmul.f32 %v2427_v10, %v2635_v13  ;;  %v1467_v61 = vadd.f32 %v1435_v25, %v1366_v41  ;;  %706 = vst [vmem:[#allocation2 + $0x1a8] sm:$0xff] %v2715_v9 }
 0x131   : > { %709 = vst [vmem:[#allocation2 + $0x1d0] sm:$0xff] %v637_v52  ;;  %v861_v45 = vadd.f32 %v829_v17, %v760_v21  ;;  %v1031_v59 = vmul.f32 %v2459_v40, %v2672_v20  ;;  %v1032_v56 = vmul.f32 %v2459_v40, %v2680_v18  ;;  %v1468_v2 = vadd.f32 %v1436_v12, %v1367_v7  ;;  %v2738_v36 = vpop.f32.mrb[28].mxu0  ;;  %v2759_v7 = vld [vmem:[#allocation2 + $0xd1] sm:$0xff] }
 0x132   : > { %v1537_v6 = vmul.f32 %v2487_v54, %v1501_v0  ;;  %v961_v19 = vadd.f32 %v929_v37, %v860_v33  ;;  %v1132_v13 = vmul.f32 %v2438_v28, %v2541_v51  ;;  %v1568_v3 = vadd.f32 %v1536_v8, %v1467_v61  ;;  %v595_v30 = vpop.f32.mrb[29].mxu0 }
 0x133   : > { %v962_v23 = vadd.f32 %v930_v44, %v861_v45  ;;  %v1133_v24 = vmul.f32 %v2438_v28, %v2552_v55  ;;  %v1233_v25 = vmul.f32 %v2496_v58, %v2687_v22  ;;  %v1234_v60 = vmul.f32 %v2496_v58, %v1501_v0  ;;  %v2158_v50 = vpop.f32.mrb[30].mxu0 }
 0x134   : > { %v1569_v12 = vadd.f32 %v1537_v6, %v1468_v2  ;;  %v1063_v34 = vadd.f32 %v1031_v59, %v961_v19  ;;  %v1336_v38 = vmul.f32 %v2465_v42, %v2731_v49  ;;  %v1607_v8 = vadd.f32 %v2578_v26, %v1568_v3  ;;  %v2754_v21 = vpop.f32.mrb[31].mxu0 }
 0x135   : > { %v1064_v39 = vadd.f32 %v1032_v56, %v962_v23  ;;  %v1337_v62 = vmul.f32 %v2465_v42, %v2736_v15  ;;  %v1437_v48 = vmul.f32 %v2443_v29, %v2538_v31  ;;  %v1438_v17 = vmul.f32 %v2443_v29, %v2545_v63 }
 0x136   : > { %v1608_v32 = vadd.f32 %v2578_v26, %v1569_v12  ;;  %v1164_v41 = vadd.f32 %v1132_v13, %v1063_v34  ;;  %v1538_v33 = vmul.f32 %v2487_v54, %v2744_v27  ;;  %v583_v44 = vadd.f32 %v2414_v4, %v582_v46  ;;  %v2788_v34 = vld [vmem:[#allocation2 + $0xef] sm:$0xff] }
 0x137   : > { %v1165_v37 = vadd.f32 %v1133_v24, %v1064_v39  ;;  %v761_v61 = vmul.f32 %v2409_v1, %v2672_v20  ;;  %v762_v45 = vmul.f32 %v2409_v1, %v2680_v18  ;;  %v830_v2 = vmul.f32 %v2419_v5, %v2541_v51  ;;  %v2792_v39 = vld [vmem:[#allocation2 + $0xe9] sm:$0xff] }
 0x138   : > { %v1636_v59 = vpack.c.bf16 %v1608_v32, %v1607_v8  ;;  %v1265_v56 = vadd.f32 %v1233_v25, %v1164_v41  ;;  %v831_v6 = vmul.f32 %v2419_v5, %v2552_v55  ;;  %v1539_v13 = vmul.f32 %v2487_v54, %v2759_v7  ;;  %v2779_v25 = vld [vmem:[#allocation2 + $0xe7] sm:$0xff] }
 0x139   : > { %v1266_v19 = vadd.f32 %v1234_v60, %v1165_v37  ;;  %v2774_v3 = vmax.f32 %v583_v44, 0.0  ;;  %v931_v20 = vmul.f32 %v2427_v10, %v2687_v22  ;;  %v862_v18 = vadd.f32 %v830_v2, %v761_v61 }
 0x13a   : > { %2180 = vmatmul.mubr.bf16.gmra.mrb[4].mxu1 %v1636_v59  ;;  %v1368_v46 = vadd.f32 %v1336_v38, %v1265_v56  ;;  %v863_v23 = vadd.f32 %v831_v6, %v762_v45  ;;  %v932_v24 = vmul.f32 %v2427_v10, %v1501_v0  ;;  %v1033_v55 = vmul.f32 %v2459_v40, %v2731_v49 }
 0x13b   : > { %v1369_v51 = vadd.f32 %v1337_v62, %v1266_v19  ;;  %707 = vst [vmem:[#allocation2 + $0x1b0] sm:$0xff] %v2774_v3  ;;  %v1034_v12 = vmul.f32 %v2459_v40, %v2736_v15  ;;  %v1134_v22 = vmul.f32 %v2438_v28, %v2538_v31  ;;  %v963_v38 = vadd.f32 %v931_v20, %v862_v18 }
 0x13c   : > { %v1469_v60 = vadd.f32 %v1437_v48, %v1368_v46  ;;  %v964_v8 = vadd.f32 %v932_v24, %v863_v23  ;;  %v1135_v0 = vmul.f32 %v2438_v28, %v2545_v63  ;;  %v1235_v32 = vmul.f32 %v2496_v58, %v2744_v27 }
 0x13d   : > { %v1470_v62 = vadd.f32 %v1438_v17, %v1369_v51  ;;  %v1236_v41 = vmul.f32 %v2496_v58, %v2759_v7  ;;  %v1338_v37 = vmul.f32 %v2465_v42, %v2779_v25  ;;  %v1065_v61 = vadd.f32 %v1033_v55, %v963_v38  ;;  %v2820_v55 = vld [vmem:[#allocation2 + $0xf1] sm:$0xff] }
 0x13e   : > { %v1570_v44 = vadd.f32 %v1538_v33, %v1469_v60  ;;  %v1066_v48 = vadd.f32 %v1034_v12, %v964_v8  ;;  %v1339_v45 = vmul.f32 %v2465_v42, %v2788_v34  ;;  %v1439_v56 = vmul.f32 %v2443_v29, %v2590_v57 }
 0x13f   : > { %v1571_v59 = vadd.f32 %v1539_v13, %v1470_v62  ;;  %v1440_v17 = vmul.f32 %v2443_v29, %v2600_v11  ;;  %v1540_v2 = vmul.f32 %v2487_v54, %v2792_v39  ;;  %v1166_v19 = vadd.f32 %v1134_v22, %v1065_v61 }
 0x140   : > { %v1609_v6 = vadd.f32 %v2578_v26, %v1570_v44  ;;  %v1167_v20 = vadd.f32 %v1135_v0, %v1066_v48  ;;  %v2811_v33 = vadd.f32 %v2738_v36, %v2414_v4  ;;  %v596_v13 = vadd.f32 %v2414_v4, %v595_v30  ;;  %v2847_v44 = vld [vmem:[#allocation2 + $0x107] sm:$0xff] }
 0x141   : > { %v1610_v46 = vadd.f32 %v2578_v26, %v1571_v59  ;;  %v2816_v18 = vadd.f32 %v2158_v50, %v2414_v4  ;;  %v763_v23 = vmul.f32 %v2409_v1, %v2731_v49  ;;  %v1267_v24 = vadd.f32 %v1235_v32, %v1166_v19 }
 0x142   : > { %v1268_v51 = vadd.f32 %v1236_v41, %v1167_v20  ;;  %v640_v12 = vmax.f32 %v2811_v33, 0.0  ;;  %v764_v36 = vmul.f32 %v2409_v1, %v2736_v15  ;;  %v2825_v60 = vmax.f32 %v596_v13, 0.0 }
 0x143   : > { %v1637_v22 = vpack.c.bf16 %v1610_v46, %v1609_v6  ;;  %v641_v30 = vmax.f32 %v2816_v18, 0.0  ;;  %v832_v50 = vmul.f32 %v2419_v5, %v2538_v31  ;;  %v1370_v38 = vadd.f32 %v1338_v37, %v1267_v24 }
 0x144   : > { %v1371_v8 = vadd.f32 %v1339_v45, %v1268_v51  ;;  %712 = vst [vmem:[#allocation2 + $0x208] sm:$0xff] %v640_v12  ;;  %v833_v49 = vmul.f32 %v2419_v5, %v2545_v63  ;;  %v933_v0 = vmul.f32 %v2427_v10, %v2744_v27  ;;  %v1541_v15 = vmul.f32 %v2487_v54, %v2820_v55  ;;  %v2851_v45 = vld [vmem:[#allocation2 + $0x10f] sm:$0xff] }
 0x145   : > { %2183 = vmatprep.mubr.bf16.mxu1 %v1637_v22  ;;  %710 = vst [vmem:[#allocation2 + $0x1e8] sm:$0xff] %v2825_v60  ;;  %713 = vst [vmem:[#allocation2 + $0x210] sm:$0xff] %v641_v30  ;;  %v864_v31 = vadd.f32 %v832_v50, %v763_v23  ;;  %v934_v62 = vmul.f32 %v2427_v10, %v2759_v7  ;;  %v1035_v32 = vmul.f32 %v2459_v40, %v2779_v25  ;;  %v799_v51 = vld [vmem:[#allocation2 + $0xf0] sm:$0xff] }
 0x146   : > { %v1471_v63 = vadd.f32 %v1439_v56, %v1370_v38  ;;  %v1472_v41 = vadd.f32 %v1440_v17, %v1371_v8  ;;  %v865_v37 = vadd.f32 %v833_v49, %v764_v36  ;;  %v1036_v27 = vmul.f32 %v2459_v40, %v2788_v34  ;;  %v1405_v56 = vld [vmem:[#allocation2 + $0x108] sm:$0xff] }
 0x147   : > { %v965_v61 = vadd.f32 %v933_v0, %v864_v31  ;;  %v1136_v48 = vmul.f32 %v2438_v28, %v2590_v57  ;;  %v1137_v19 = vmul.f32 %v2438_v28, %v2600_v11  ;;  %v1237_v20 = vmul.f32 %v2496_v58, %v2792_v39  ;;  %v798_v57 = vld [vmem:[#allocation2 + $0xe8] sm:$0xff] }
 0x148   : > { %v1572_v59 = vadd.f32 %v1540_v2, %v1471_v63  ;;  %v1573_v6 = vadd.f32 %v1541_v15, %v1472_v41  ;;  %v966_v7 = vadd.f32 %v934_v62, %v865_v37  ;;  %v1238_v46 = vmul.f32 %v2496_v58, %v2820_v55  ;;  %v1506_v50 = vld [vmem:[#allocation2 + $0x109] sm:$0xff]  ;;  %v1507_v15 = vld [vmem:[#allocation2 + $0x111] sm:$0xff] }
 0x149   : > { %v1067_v17 = vadd.f32 %v1035_v32, %v965_v61  ;;  %v1340_v13 = vmul.f32 %v2465_v42, %v2847_v44  ;;  %v1341_v11 = vmul.f32 %v2465_v42, %v2851_v45  ;;  %v1441_v22 = vmul.f32 %v2443_v29, %v1405_v56 }
 0x14a   : > { %v1611_v23 = vadd.f32 %v2578_v26, %v1572_v59  ;;  %v1612_v2 = vadd.f32 %v2578_v26, %v1573_v6  ;;  %v1068_v24 = vadd.f32 %v1036_v27, %v966_v7  ;;  %v599_v38 = vadd.f32 %v2414_v4, %v2754_v21 }
 0x14b   : > { %v1168_v36 = vadd.f32 %v1136_v48, %v1067_v17  ;;  %v765_v8 = vmul.f32 %v2409_v1, %v2779_v25  ;;  %v766_v31 = vmul.f32 %v2409_v1, %v2788_v34  ;;  %v834_v62 = vmul.f32 %v2419_v5, %v798_v57  ;;  %v1103_v34 = vld [vmem:[#allocation2 + $0x110] sm:$0xff] }
 0x14c   : > { %v1638_v49 = vpack.c.bf16 %v1612_v2, %v1611_v23  ;;  %v1169_v0 = vadd.f32 %v1137_v19, %v1068_v24  ;;  %v2873_v63 = vmax.f32 %v599_v38, 0.0  ;;  %v835_v41 = vmul.f32 %v2419_v5, %v799_v51  ;;  %v2890_v19 = vld [vmem:[#allocation2 + $0x127] sm:$0xff]  ;;  %v2892_v17 = vld [vmem:[#allocation2 + $0x12f] sm:$0xff] }
 0x14d   : > { %v1269_v32 = vadd.f32 %v1237_v20, %v1168_v36  ;;  %v935_v37 = vmul.f32 %v2427_v10, %v2792_v39  ;;  %v1442_v21 = vmul.f32 %v2443_v29, %v625_v43  ;;  %v1542_v25 = vmul.f32 %v2487_v54, %v1506_v50  ;;  %v2896_v23 = vld [vmem:[#allocation2 + $0x128] sm:$0xff] }
 0x14e   : > { %2184 = vmatmul.mubr.bf16.gmra.mrb[8].mxu1 %v1638_v49  ;;  %v1270_v4 = vadd.f32 %v1238_v46, %v1169_v0  ;;  %v866_v27 = vadd.f32 %v834_v62, %v765_v8  ;;  %v1543_v48 = vmul.f32 %v2487_v54, %v1507_v15  ;;  %711 = vst [vmem:[#allocation2 + $0x1f0] sm:$0xff] %v2873_v63 }
 0x14f   : > { %v1372_v61 = vadd.f32 %v1340_v13, %v1269_v32  ;;  %v867_v59 = vadd.f32 %v835_v41, %v766_v31  ;;  %v936_v6 = vmul.f32 %v2427_v10, %v2820_v55  ;;  %v1037_v47 = vmul.f32 %v2459_v40, %v2847_v44 }
 0x150   : > { %v1373_v39 = vadd.f32 %v1341_v11, %v1270_v4  ;;  %v967_v7 = vadd.f32 %v935_v37, %v866_v27  ;;  %v1038_v43 = vmul.f32 %v2459_v40, %v2851_v45  ;;  %v1138_v13 = vmul.f32 %v2438_v28, %v1405_v56 }
 0x151   : > { %v1473_v20 = vadd.f32 %v1441_v22, %v1372_v61  ;;  %v968_v46 = vadd.f32 %v936_v6, %v867_v59  ;;  %v1139_v57 = vmul.f32 %v2438_v28, %v1103_v34  ;;  %v1239_v24 = vmul.f32 %v2496_v58, %v1506_v50  ;;  %v1509_v59 = vld [vmem:[#allocation2 + $0x131] sm:$0xff] }
 0x152   : > { %v1474_v55 = vadd.f32 %v1442_v21, %v1373_v39  ;;  %v1069_v2 = vadd.f32 %v1037_v47, %v967_v7  ;;  %v1240_v11 = vmul.f32 %v2496_v58, %v1507_v15  ;;  %v1342_v38 = vmul.f32 %v2465_v42, %v2890_v19 }
 0x153   : > { %v1574_v51 = vadd.f32 %v1542_v25, %v1473_v20  ;;  %v1070_v36 = vadd.f32 %v1038_v43, %v968_v46  ;;  %v1343_v22 = vmul.f32 %v2465_v42, %v2892_v17  ;;  %v1443_v0 = vmul.f32 %v2443_v29, %v2896_v23  ;;  %v1508_v25 = vld [vmem:[#allocation2 + $0x129] sm:$0xff] }
 0x154   : > { %v1575_v8 = vadd.f32 %v1543_v48, %v1474_v55  ;;  %v1170_v49 = vadd.f32 %v1138_v13, %v1069_v2  ;;  %v767_v31 = vmul.f32 %v2409_v1, %v2847_v44  ;;  %v768_v41 = vmul.f32 %v2409_v1, %v2851_v45  ;;  %v2923_v20 = vld [vmem:[#allocation2 + $0x147] sm:$0xff] }
 0x155   : > { %v1613_v62 = vadd.f32 %v2578_v26, %v1574_v51  ;;  %v1171_v32 = vadd.f32 %v1139_v57, %v1070_v36  ;;  %v836_v37 = vmul.f32 %v2419_v5, %v1405_v56  ;;  %v837_v27 = vmul.f32 %v2419_v5, %v1103_v34  ;;  %v2928_v57 = vld [vmem:[#allocation2 + $0x14f] sm:$0xff] }
 0x156   : > { %v1614_v4 = vadd.f32 %v2578_v26, %v1575_v8  ;;  %v1271_v21 = vadd.f32 %v1239_v24, %v1170_v49  ;;  %v937_v61 = vmul.f32 %v2427_v10, %v1506_v50  ;;  %v938_v44 = vmul.f32 %v2427_v10, %v1507_v15  ;;  %v2930_v55 = vld [vmem:[#allocation2 + $0x148] sm:$0xff] }
 0x157   : > { %v1272_v48 = vadd.f32 %v1240_v11, %v1171_v32  ;;  %v868_v6 = vadd.f32 %v836_v37, %v767_v31  ;;  %v1039_v39 = vmul.f32 %v2459_v40, %v2890_v19  ;;  %v869_v47 = vadd.f32 %v837_v27, %v768_v41 }
 0x158   : > { %v1639_v7 = vpack.c.bf16 %v1614_v4, %v1613_v62  ;;  %v1374_v45 = vadd.f32 %v1342_v38, %v1271_v21  ;;  %v1040_v56 = vmul.f32 %v2459_v40, %v2892_v17  ;;  %v1444_v5 = vmul.f32 %v2443_v29, %v2639_v14  ;;  %v1410_v62 = vld [vmem:[#allocation2 + $0x150] sm:$0xff]  ;;  %v2948_v21 = vld [vmem:[%s3323_s3] ss:$0 sm:$0xff] }
 0x159   : > { %v1375_v43 = vadd.f32 %v1343_v22, %v1272_v48  ;;  %v1544_v50 = vmul.f32 %v2487_v54, %v1508_v25  ;;  %v969_v34 = vadd.f32 %v937_v61, %v868_v6  ;;  %v1545_v15 = vmul.f32 %v2487_v54, %v1509_v59  ;;  %v1510_v6 = vld [vmem:[#allocation2 + $0x149] sm:$0xff] }
 0x15a   : > { %2187 = vmatprep.mubr.bf16.mxu1 %v1639_v7  ;;  %v1475_v10 = vadd.f32 %v1443_v0, %v1374_v45  ;;  %v970_v46 = vadd.f32 %v938_v44, %v869_v47  ;;  %v1140_v13 = vmul.f32 %v2438_v28, %v2896_v23  ;;  %v1141_v11 = vmul.f32 %v2438_v28, %v2639_v14  ;;  %v1511_v44 = vld [vmem:[#allocation2 + $0x151] sm:$0xff] }
 0x15b   : > { %v1476_v2 = vadd.f32 %v1444_v5, %v1375_v43  ;;  %v1071_v24 = vadd.f32 %v1039_v39, %v969_v34  ;;  %v1241_v51 = vmul.f32 %v2496_v58, %v1508_v25  ;;  %v1242_v22 = vmul.f32 %v2496_v58, %v1509_v59  ;;  %v2956_v39 = vld [vmem:[%s3323_s3 + $0x1] ss:$0 sm:$0xff] }
 0x15c   : > { %v1576_v36 = vadd.f32 %v1544_v50, %v1475_v10  ;;  %v1072_v38 = vadd.f32 %v1040_v56, %v970_v46  ;;  %v1344_v8 = vmul.f32 %v2465_v42, %v2923_v20  ;;  %v1345_v31 = vmul.f32 %v2465_v42, %v2928_v57 }
 0x15d   : > { %v1577_v49 = vadd.f32 %v1545_v15, %v1476_v2  ;;  %v1172_v0 = vadd.f32 %v1140_v13, %v1071_v24  ;;  %v1445_v32 = vmul.f32 %v2443_v29, %v2930_v55  ;;  %v769_v4 = vmul.f32 %v2409_v1, %v2890_v19  ;;  %v2978_v2 = vld [vmem:[#allocation2 + $0x16f] sm:$0xff] }
 0x15e   : > { %v1615_v41 = vadd.f32 %v2578_v26, %v1576_v36  ;;  %v1173_v37 = vadd.f32 %v1141_v11, %v1072_v38  ;;  %v770_v27 = vmul.f32 %v2948_v21, %v2892_v17  ;;  %v838_v1 = vmul.f32 %v2956_v39, %v2896_v23  ;;  %v2966_v17 = vld [vmem:[%s3323_s3 + $0x2] ss:$0 sm:$0xff] }
 0x15f   : > { %v1616_v61 = vadd.f32 %v2578_v26, %v1577_v49  ;;  %v1273_v48 = vadd.f32 %v1241_v51, %v1172_v0  ;;  %v839_v19 = vmul.f32 %v2956_v39, %v2639_v14  ;;  %v1446_v45 = vmul.f32 %v2443_v29, %v1410_v62 }
 0x160   : > { %v1274_v7 = vadd.f32 %v1242_v22, %v1173_v37  ;;  %v939_v47 = vmul.f32 %v2966_v17, %v1508_v25  ;;  %v940_v56 = vmul.f32 %v2966_v17, %v1509_v59  ;;  %v870_v50 = vadd.f32 %v838_v1, %v769_v4  ;;  %v2976_v59 = vld [vmem:[#allocation2 + $0x167] sm:$0xff] }
 0x161   : > { %v1640_v43 = vpack.c.bf16 %v1616_v61, %v1615_v41  ;;  %v1376_v5 = vadd.f32 %v1344_v8, %v1273_v48  ;;  %v871_v34 = vadd.f32 %v839_v19, %v770_v27  ;;  %v1546_v10 = vmul.f32 %v2487_v54, %v1510_v6  ;;  %v1512_v19 = vld [vmem:[#allocation2 + $0x169] sm:$0xff] }
 0x162   : > { %v1377_v23 = vadd.f32 %v1345_v31, %v1274_v7  ;;  %v1547_v14 = vmul.f32 %v2487_v54, %v1511_v44  ;;  %v1041_v29 = vmul.f32 %v2459_v40, %v2923_v20  ;;  %v971_v46 = vadd.f32 %v939_v47, %v870_v50  ;;  %v2992_v31 = vld [vmem:[%s3323_s3 + $0x9] ss:$0 sm:$0xff]  ;;  %v1513_v7 = vld [vmem:[#allocation2 + $0x171] sm:$0xff] }
 0x163   : > { %2188 = vmatmul.mubr.bf16.gmra.mrb[12].mxu1 %v1640_v43  ;;  %v1477_v15 = vadd.f32 %v1445_v32, %v1376_v5  ;;  %v972_v13 = vadd.f32 %v940_v56, %v871_v34  ;;  %v1042_v25 = vmul.f32 %v2459_v40, %v2928_v57  ;;  %v1142_v11 = vmul.f32 %v2438_v28, %v2930_v55 }
 0x164   : > { %v1478_v24 = vadd.f32 %v1446_v45, %v1377_v23  ;;  %v1143_v54 = vmul.f32 %v2438_v28, %v1410_v62  ;;  %v1243_v51 = vmul.f32 %v2496_v58, %v1510_v6  ;;  %v1073_v38 = vadd.f32 %v1041_v29, %v971_v46  ;;  %v3025_v29 = vld [vmem:[#allocation2 + $0x187] sm:$0xff] }
 0x165   : > { %v1578_v36 = vadd.f32 %v1546_v10, %v1477_v15  ;;  %v1074_v22 = vadd.f32 %v1042_v25, %v972_v13  ;;  %v1244_v8 = vmul.f32 %v2496_v58, %v1511_v44  ;;  %v1346_v40 = vmul.f32 %v2465_v42, %v2976_v59  ;;  %v3027_v15 = vld [vmem:[#allocation2 + $0x18f] sm:$0xff]  ;;  %v3032_v25 = vld [vmem:[%s3323_s3 + $0x5] ss:$0 sm:$0xff] }
 0x166   : > { %v1579_v49 = vadd.f32 %v1547_v14, %v1478_v24  ;;  %v1347_v0 = vmul.f32 %v2465_v42, %v2978_v2  ;;  %v1447_v28 = vmul.f32 %v2992_v31, %v2667_v53  ;;  %v1174_v41 = vadd.f32 %v1142_v11, %v1073_v38  ;;  %v3043_v38 = vld [vmem:[%s3323_s3 + $0x6] ss:$0 sm:$0xff] }
 0x167   : > { %v1617_v32 = vadd.f32 %v2578_v26, %v1578_v36  ;;  %v1175_v37 = vadd.f32 %v1143_v54, %v1074_v22  ;;  %v771_v58 = vmul.f32 %v2948_v21, %v2923_v20  ;;  %v772_v42 = vmul.f32 %v2948_v21, %v2928_v57  ;;  %v3010_v57 = vld [vmem:[%s3323_s3 + $0x4] ss:$0 sm:$0xff]  ;;  %v3038_v54 = vld [vmem:[#allocation2 + $0x188] sm:$0xff] }
 0x168   : > { %v1618_v4 = vadd.f32 %v2578_v26, %v1579_v49  ;;  %v840_v27 = vmul.f32 %v2956_v39, %v2930_v55  ;;  %v841_v61 = vmul.f32 %v2956_v39, %v1410_v62  ;;  %v1275_v48 = vadd.f32 %v1243_v51, %v1174_v41  ;;  %v806_v49 = vld [vmem:[#allocation2 + $0x168] sm:$0xff] }
 0x169   : > { %v1276_v1 = vadd.f32 %v1244_v8, %v1175_v37  ;;  %v941_v45 = vmul.f32 %v2966_v17, %v1510_v6  ;;  %v942_v47 = vmul.f32 %v2966_v17, %v1511_v44  ;;  %v1043_v55 = vmul.f32 %v3010_v57, %v2976_v59  ;;  %v3021_v44 = vld [vmem:[%s3323_s3 + $0xa] ss:$0 sm:$0xff] }
 0x16a   : > { %v1641_v56 = vpack.c.bf16 %v1618_v4, %v1617_v32  ;;  %v872_v20 = vadd.f32 %v840_v27, %v771_v58  ;;  %v873_v43 = vadd.f32 %v841_v61, %v772_v42  ;;  %v1378_v62 = vadd.f32 %v1346_v40, %v1275_v48  ;;  %v1414_v58 = vld [vmem:[#allocation2 + $0x190] sm:$0xff] }
 0x16b   : > { %v1379_v5 = vadd.f32 %v1347_v0, %v1276_v1  ;;  %v1448_v50 = vmul.f32 %v2992_v31, %v2676_v16  ;;  %v1044_v6 = vmul.f32 %v3010_v57, %v2978_v2  ;;  %v1548_v34 = vmul.f32 %v3021_v44, %v1512_v19  ;;  %v1514_v42 = vld [vmem:[#allocation2 + $0x189] sm:$0xff] }
 0x16c   : > { %2191 = vmatprep.mubr.bf16.mxu1 %v1641_v56  ;;  %v1549_v23 = vmul.f32 %v3021_v44, %v1513_v7  ;;  %v973_v10 = vadd.f32 %v941_v45, %v872_v20  ;;  %v974_v14 = vadd.f32 %v942_v47, %v873_v43  ;;  %v1479_v46 = vadd.f32 %v1447_v28, %v1378_v62  ;;  %v1515_v20 = vld [vmem:[#allocation2 + $0x191] sm:$0xff] }
 0x16d   : > { %v1480_v13 = vadd.f32 %v1448_v50, %v1379_v5  ;;  %v1144_v24 = vmul.f32 %v3032_v25, %v2667_v53  ;;  %v1145_v11 = vmul.f32 %v3032_v25, %v2676_v16  ;;  %v1245_v22 = vmul.f32 %v3043_v38, %v1512_v19  ;;  %v3050_v53 = vld [vmem:[%s3323_s3 + $0x8] ss:$0 sm:$0xff] }
 0x16e   : > { %v1075_v51 = vadd.f32 %v1043_v55, %v973_v10  ;;  %v1076_v36 = vadd.f32 %v1044_v6, %v974_v14  ;;  %v1246_v8 = vmul.f32 %v3043_v38, %v1513_v7  ;;  %v1580_v40 = vadd.f32 %v1548_v34, %v1479_v46  ;;  %v1314_v46 = vld [vmem:[#allocation2 + $0x1a7] sm:$0xff] }
 0x16f   : > { %v1581_v0 = vadd.f32 %v1549_v23, %v1480_v13  ;;  %v1348_v28 = vmul.f32 %v3050_v53, %v3025_v29  ;;  %v1349_v32 = vmul.f32 %v3050_v53, %v3027_v15  ;;  %v1449_v4 = vmul.f32 %v2992_v31, %v3038_v54 }
 0x170   : > { %v1176_v41 = vadd.f32 %v1144_v24, %v1075_v51  ;;  %v1177_v37 = vadd.f32 %v1145_v11, %v1076_v36  ;;  %v773_v27 = vmul.f32 %v2948_v21, %v2976_v59  ;;  %v1619_v61 = vadd.f32 %v2578_v26, %v1580_v40  ;;  %v1315_v36 = vld [vmem:[#allocation2 + $0x1af] sm:$0xff] }
 0x171   : > { %v1620_v48 = vadd.f32 %v2578_v26, %v1581_v0  ;;  %v774_v1 = vmul.f32 %v2948_v21, %v2978_v2  ;;  %v842_v45 = vmul.f32 %v2956_v39, %v806_v49  ;;  %v843_v43 = vmul.f32 %v2956_v39, %v2676_v16 }
 0x172   : > { %v1277_v47 = vadd.f32 %v1245_v22, %v1176_v41  ;;  %v1278_v56 = vadd.f32 %v1246_v8, %v1177_v37  ;;  %v943_v55 = vmul.f32 %v2966_v17, %v1512_v19  ;;  %v1450_v59 = vmul.f32 %v2992_v31, %v1414_v58 }
 0x173   : > { %v1642_v62 = vpack.c.bf16 %v1620_v48, %v1619_v61  ;;  %v1550_v5 = vmul.f32 %v3021_v44, %v1514_v42  ;;  %v874_v50 = vadd.f32 %v842_v45, %v773_v27  ;;  %v875_v23 = vadd.f32 %v843_v43, %v774_v1  ;;  %v1517_v43 = vld [vmem:[#allocation2 + $0x1b1] sm:$0xff] }
 0x174   : > { %v1380_v6 = vadd.f32 %v1348_v28, %v1277_v47  ;;  %v1381_v34 = vadd.f32 %v1349_v32, %v1278_v56  ;;  %v944_v2 = vmul.f32 %v2966_v17, %v1513_v7  ;;  %v1551_v10 = vmul.f32 %v3021_v44, %v1515_v20  ;;  %v1516_v56 = vld [vmem:[#allocation2 + $0x1a9] sm:$0xff] }
 0x175   : > { %2192 = vmatmul.mubr.bf16.gmra.mrb[16].mxu1 %v1642_v62  ;;  %v975_v14 = vadd.f32 %v943_v55, %v874_v50  ;;  %v1045_v16 = vmul.f32 %v3010_v57, %v3025_v29  ;;  %v1046_v19 = vmul.f32 %v3010_v57, %v3027_v15  ;;  %v1146_v51 = vmul.f32 %v3032_v25, %v3038_v54 }
 0x176   : > { %v1481_v13 = vadd.f32 %v1449_v4, %v1380_v6  ;;  %v1482_v24 = vadd.f32 %v1450_v59, %v1381_v34  ;;  %v976_v11 = vadd.f32 %v944_v2, %v875_v23  ;;  %v1147_v7 = vmul.f32 %v3032_v25, %v1414_v58 }
 0x177   : > { %v1077_v22 = vadd.f32 %v1045_v16, %v975_v14  ;;  %v1247_v8 = vmul.f32 %v3043_v38, %v1514_v42  ;;  %v1248_v49 = vmul.f32 %v3043_v38, %v1515_v20  ;;  %v1350_v32 = vmul.f32 %v3050_v53, %v1314_v46 }
 0x178   : > { %v1582_v40 = vadd.f32 %v1550_v5, %v1481_v13  ;;  %v1583_v0 = vadd.f32 %v1551_v10, %v1482_v24  ;;  %v1078_v28 = vadd.f32 %v1046_v19, %v976_v11  ;;  %v1351_v37 = vmul.f32 %v3050_v53, %v1315_v36  ;;  %v3102_v10 = vld [vmem:[#allocation2 + $0x1c7] sm:$0xff]  ;;  %v1317_v13 = vld [vmem:[#allocation2 + $0x1cf] sm:$0xff] }
 0x179   : > { %v1178_v41 = vadd.f32 %v1146_v51, %v1077_v22  ;;  %v1451_v4 = vmul.f32 %v2992_v31, %v2715_v9  ;;  %v775_v27 = vmul.f32 %v2948_v21, %v3025_v29  ;;  %v776_v45 = vmul.f32 %v2948_v21, %v3027_v15  ;;  %v3106_v24 = vld [vmem:[#allocation2 + $0x1c8] sm:$0xff] }
 0x17a   : > { %v1621_v61 = vadd.f32 %v2578_v26, %v1582_v40  ;;  %v1622_v48 = vadd.f32 %v2578_v26, %v1583_v0  ;;  %v1179_v1 = vadd.f32 %v1147_v7, %v1078_v28  ;;  %v844_v55 = vmul.f32 %v2956_v39, %v3038_v54  ;;  %v810_v28 = vld [vmem:[#allocation2 + $0x1a8] sm:$0xff] }
 0x17b   : > { %v1279_v47 = vadd.f32 %v1247_v8, %v1178_v41  ;;  %v845_v62 = vmul.f32 %v2956_v39, %v1414_v58  ;;  %v945_v59 = vmul.f32 %v2966_v17, %v1514_v42  ;;  %v946_v50 = vmul.f32 %v2966_v17, %v1515_v20 }
 0x17c   : > { %v1643_v5 = vpack.c.bf16 %v1622_v48, %v1621_v61  ;;  %v1280_v29 = vadd.f32 %v1248_v49, %v1179_v1  ;;  %v1047_v26 = vmul.f32 %v3010_v57, %v1314_v46  ;;  %v876_v34 = vadd.f32 %v844_v55, %v775_v27  ;;  %v3121_v27 = vld [vmem:[%s3324_s4] ss:$0 sm:$0xff]  ;;  %v1519_v55 = vld [vmem:[#allocation2 + $0x1d1] sm:$0xff] }
 0x17d   : > { %v1382_v6 = vadd.f32 %v1350_v32, %v1279_v47  ;;  %v877_v23 = vadd.f32 %v845_v62, %v776_v45  ;;  %v1048_v15 = vmul.f32 %v3010_v57, %v1315_v36  ;;  %v1452_v54 = vmul.f32 %v2992_v31, %v2774_v3 }
 0x17e   : > { %2195 = vmatprep.mubr.bf16.mxu1 %v1643_v5  ;;  %v1383_v2 = vadd.f32 %v1351_v37, %v1280_v29  ;;  %v1552_v58 = vmul.f32 %v3021_v44, %v1516_v56  ;;  %v1553_v42 = vmul.f32 %v3021_v44, %v1517_v43  ;;  %v977_v20 = vadd.f32 %v945_v59, %v876_v34  ;;  %v1518_v37 = vld [vmem:[#allocation2 + $0x1c9] sm:$0xff] }
 0x17f   : > { %v1483_v14 = vadd.f32 %v1451_v4, %v1382_v6  ;;  %v978_v16 = vadd.f32 %v946_v50, %v877_v23  ;;  %v1148_v19 = vmul.f32 %v3032_v25, %v2715_v9  ;;  %v1149_v51 = vmul.f32 %v3032_v25, %v2774_v3 }
 0x180   : > { %v1484_v11 = vadd.f32 %v1452_v54, %v1383_v2  ;;  %v1249_v22 = vmul.f32 %v3043_v38, %v1516_v56  ;;  %v1250_v7 = vmul.f32 %v3043_v38, %v1517_v43  ;;  %v1079_v49 = vadd.f32 %v1047_v26, %v977_v20  ;;  %v1319_v20 = vld [vmem:[#allocation2 + $0x1ef] sm:$0xff] }
 0x181   : > { %v1584_v8 = vadd.f32 %v1552_v58, %v1483_v14  ;;  %v1080_v40 = vadd.f32 %v1048_v15, %v978_v16  ;;  %v1352_v0 = vmul.f32 %v3050_v53, %v3102_v10  ;;  %v1353_v9 = vmul.f32 %v3050_v53, %v1317_v13  ;;  %v1115_v15 = vld [vmem:[#allocation2 + $0x1d0] sm:$0xff]  ;;  %v3138_v58 = vld [vmem:[#allocation2 + $0x1e7] sm:$0xff] }
 0x182   : > { %v1585_v32 = vadd.f32 %v1553_v42, %v1484_v11  ;;  %v1453_v41 = vmul.f32 %v2992_v31, %v3106_v24  ;;  %v777_v4 = vmul.f32 %v2948_v21, %v1314_v46  ;;  %v1180_v48 = vadd.f32 %v1148_v19, %v1079_v49 }
 0x183   : > { %v1623_v61 = vadd.f32 %v3121_v27, %v1584_v8  ;;  %v1181_v1 = vadd.f32 %v1149_v51, %v1080_v40  ;;  %v778_v45 = vmul.f32 %v2948_v21, %v1315_v36  ;;  %v846_v62 = vmul.f32 %v2956_v39, %v810_v28 }
 0x184   : > { %v1624_v47 = vadd.f32 %v3121_v27, %v1585_v32  ;;  %v847_v59 = vmul.f32 %v2956_v39, %v2774_v3  ;;  %v947_v46 = vmul.f32 %v2966_v17, %v1516_v56  ;;  %v1281_v5 = vadd.f32 %v1249_v22, %v1180_v48 }
 0x185   : > { %v1282_v29 = vadd.f32 %v1250_v7, %v1181_v1  ;;  %v1454_v50 = vmul.f32 %v2992_v31, %v637_v52  ;;  %v1554_v26 = vmul.f32 %v3021_v44, %v1518_v37  ;;  %v878_v36 = vadd.f32 %v846_v62, %v777_v4 }
 0x186   : > { %v1644_v6 = vpack.c.bf16 %v1624_v47, %v1623_v61  ;;  %v879_v34 = vadd.f32 %v847_v59, %v778_v45  ;;  %v948_v23 = vmul.f32 %v2966_v17, %v1517_v43  ;;  %v1384_v2 = vadd.f32 %v1352_v0, %v1281_v5  ;;  %v1520_v59 = vld [vmem:[#allocation2 + $0x1e9] sm:$0xff] }
 0x187   : > { %v1385_v54 = vadd.f32 %v1353_v9, %v1282_v29  ;;  %v1555_v3 = vmul.f32 %v3021_v44, %v1519_v55  ;;  %v1049_v56 = vmul.f32 %v3010_v57, %v3102_v10  ;;  %v979_v35 = vadd.f32 %v947_v46, %v878_v36 }
 0x188   : > { %2196 = vmatmul.mubr.bf16.gmra.mrb[20].mxu1 %v1644_v6  ;;  %v980_v52 = vadd.f32 %v948_v23, %v879_v34  ;;  %v1050_v42 = vmul.f32 %v3010_v57, %v1317_v13  ;;  %v1150_v14 = vmul.f32 %v3032_v25, %v3106_v24  ;;  %v1485_v43 = vadd.f32 %v1453_v41, %v1384_v2 }
 0x189   : > { %v1486_v16 = vadd.f32 %v1454_v50, %v1385_v54  ;;  %v1151_v19 = vmul.f32 %v3032_v25, %v1115_v15  ;;  %v1251_v11 = vmul.f32 %v3043_v38, %v1518_v37  ;;  %v1081_v51 = vadd.f32 %v1049_v56, %v979_v35  ;;  %v1321_v35 = vld [vmem:[#allocation2 + $0x20f] sm:$0xff] }
 0x18a   : > { %v1082_v22 = vadd.f32 %v1050_v42, %v980_v52  ;;  %v1252_v7 = vmul.f32 %v3043_v38, %v1519_v55  ;;  %v1354_v8 = vmul.f32 %v3050_v53, %v3138_v58  ;;  %v1586_v49 = vadd.f32 %v1554_v26, %v1485_v43 }
 0x18b   : > { %v1587_v40 = vadd.f32 %v1555_v3, %v1486_v16  ;;  %v1355_v0 = vmul.f32 %v3050_v53, %v1319_v20  ;;  %v1455_v28 = vmul.f32 %v2992_v31, %v2825_v60  ;;  %v1182_v32 = vadd.f32 %v1150_v14, %v1081_v51  ;;  %v814_v16 = vld [vmem:[#allocation2 + $0x1e8] sm:$0xff] }
 0x18c   : > { %v1183_v9 = vadd.f32 %v1151_v19, %v1082_v22  ;;  %v779_v41 = vmul.f32 %v2948_v21, %v3102_v10  ;;  %v780_v4 = vmul.f32 %v2948_v21, %v1317_v13  ;;  %v1625_v61 = vadd.f32 %v3121_v27, %v1586_v49  ;;  %v1521_v10 = vld [vmem:[#allocation2 + $0x1f1] sm:$0xff] }
 0x18d   : > { %v1626_v48 = vadd.f32 %v3121_v27, %v1587_v40  ;;  %v848_v1 = vmul.f32 %v2956_v39, %v3106_v24  ;;  %v849_v45 = vmul.f32 %v2956_v39, %v1115_v15  ;;  %v1283_v47 = vadd.f32 %v1251_v11, %v1182_v32 }
 0x18e   : > { %v1284_v62 = vadd.f32 %v1252_v7, %v1183_v9  ;;  %v949_v46 = vmul.f32 %v2966_v17, %v1518_v37  ;;  %v950_v5 = vmul.f32 %v2966_v17, %v1519_v55  ;;  %v1051_v26 = vmul.f32 %v3010_v57, %v3138_v58  ;;  %v1320_v55 = vld [vmem:[#allocation2 + $0x207] sm:$0xff] }
 0x18f   : > { %v1645_v29 = vpack.c.bf16 %v1626_v48, %v1625_v61  ;;  %v880_v50 = vadd.f32 %v848_v1, %v779_v41  ;;  %v881_v13 = vadd.f32 %v849_v45, %v780_v4  ;;  %v1386_v6 = vadd.f32 %v1354_v8, %v1283_v47  ;;  %v1522_v4 = vld [vmem:[#allocation2 + $0x209] sm:$0xff]  ;;  %v1523_v61 = vld [vmem:[#allocation2 + $0x211] sm:$0xff] }
 0x190   : > { %v1387_v36 = vadd.f32 %v1355_v0, %v1284_v62  ;;  %v1456_v24 = vmul.f32 %v2992_v31, %v2873_v63  ;;  %v1052_v34 = vmul.f32 %v3010_v57, %v1319_v20  ;;  %v1556_v23 = vmul.f32 %v3021_v44, %v1520_v59 }
 0x191   : > { %2199 = vmatprep.mubr.bf16.mxu1 %v1645_v29  ;;  %v981_v37 = vadd.f32 %v949_v46, %v880_v50  ;;  %v982_v15 = vadd.f32 %v950_v5, %v881_v13  ;;  %v1487_v2 = vadd.f32 %v1455_v28, %v1386_v6  ;;  %v1557_v3 = vmul.f32 %v3021_v44, %v1521_v10  ;;  %v1118_v29 = vld [vmem:[#allocation2 + $0x208] sm:$0xff] }
 0x192   : > { %v1488_v54 = vadd.f32 %v1456_v24, %v1387_v36  ;;  %v1152_v56 = vmul.f32 %v3032_v25, %v2825_v60  ;;  %v1153_v14 = vmul.f32 %v3032_v25, %v2873_v63  ;;  %v1253_v43 = vmul.f32 %v3043_v38, %v1520_v59 }
 0x193   : > { %v1083_v52 = vadd.f32 %v1051_v26, %v981_v37  ;;  %v1084_v42 = vadd.f32 %v1052_v34, %v982_v15  ;;  %v1588_v19 = vadd.f32 %v1556_v23, %v1487_v2  ;;  %v1254_v51 = vmul.f32 %v3043_v38, %v1521_v10  ;;  %v1423_v34 = vld [vmem:[#allocation2 + $0x228] sm:$0xff]  ;;  %v1424_v2 = vld [vmem:[#allocation2 + $0x230] sm:$0xff] }
 0x194   : > { %v1589_v11 = vadd.f32 %v1557_v3, %v1488_v54  ;;  %v1356_v22 = vmul.f32 %v3050_v53, %v1320_v55  ;;  %v1357_v49 = vmul.f32 %v3050_v53, %v1321_v35  ;;  %v781_v60 = vmul.f32 %v2948_v21, %v3138_v58  ;;  %v2242_v15 = vld [vmem:[#allocation2 + $0x7] sm:$0xff] }
 0x195   : > { %v1184_v7 = vadd.f32 %v1152_v56, %v1083_v52  ;;  %v1185_v8 = vadd.f32 %v1153_v14, %v1084_v42  ;;  %v1627_v40 = vadd.f32 %v3121_v27, %v1588_v19  ;;  %v782_v28 = vmul.f32 %v2948_v21, %v1319_v20 }
 0x196   : > { %v1628_v0 = vadd.f32 %v3121_v27, %v1589_v11  ;;  %v850_v32 = vmul.f32 %v2956_v39, %v814_v16  ;;  %v851_v48 = vmul.f32 %v2956_v39, %v2873_v63  ;;  %v951_v1 = vmul.f32 %v2966_v17, %v1520_v59 }
 0x197   : > { %v1285_v9 = vadd.f32 %v1253_v43, %v1184_v7  ;;  %v1286_v41 = vadd.f32 %v1254_v51, %v1185_v8  ;;  %v1457_v58 = vmul.f32 %v2992_v31, %v640_v12  ;;  %v1458_v21 = vmul.f32 %v2992_v31, %v641_v30  ;;  %v1119_v12 = vld [vmem:[#allocation2 + $0x210] sm:$0xff] }
 0x198   : > { %v1646_v45 = vpack.c.bf16 %v1628_v0, %v1627_v40  ;;  %v882_v20 = vadd.f32 %v850_v32, %v781_v60  ;;  %v883_v46 = vadd.f32 %v851_v48, %v782_v28  ;;  %v952_v5 = vmul.f32 %v2966_v17, %v1521_v10 }
 0x199   : > { %v1388_v47 = vadd.f32 %v1356_v22, %v1285_v9  ;;  %v1389_v62 = vadd.f32 %v1357_v49, %v1286_v41  ;;  %v1558_v63 = vmul.f32 %v3021_v44, %v1522_v4  ;;  %v1559_v39 = vmul.f32 %v3021_v44, %v1523_v61 }
 0x19a   : > { %2200 = vmatmul.mubr.bf16.gmra.mrb[24].mxu1 %v1646_v45  ;;  %v983_v59 = vadd.f32 %v951_v1, %v882_v20  ;;  %v1053_v33 = vmul.f32 %v3010_v57, %v1320_v55  ;;  %v984_v13 = vadd.f32 %v952_v5, %v883_v46  ;;  %v1054_v30 = vmul.f32 %v3010_v57, %v1321_v35  ;;  %v1524_v35 = vld [vmem:[#allocation2 + $0x229] sm:$0xff] }
 0x19b   : > { %v1489_v50 = vadd.f32 %v1457_v58, %v1388_v47  ;;  %v1490_v18 = vadd.f32 %v1458_v21, %v1389_v62  ;;  %v1154_v6 = vmul.f32 %v3032_v25, %v1118_v29  ;;  %v1155_v24 = vmul.f32 %v3032_v25, %v1119_v12  ;;  %v1525_v25 = vld [vmem:[#allocation2 + $0x231] sm:$0xff] }
 0x19c   : > { %v1085_v26 = vadd.f32 %v1053_v33, %v983_v59  ;;  %v1086_v10 = vadd.f32 %v1054_v30, %v984_v13  ;;  %v1255_v37 = vmul.f32 %v3043_v38, %v1522_v4  ;;  %v1358_v55 = vmul.f32 %v2242_v15, %v3050_v53 }
 0x19d   : > { %v1590_v36 = vadd.f32 %v1558_v63, %v1489_v50  ;;  %v1591_v17 = vadd.f32 %v1559_v39, %v1490_v18  ;;  %v1256_v56 = vmul.f32 %v3043_v38, %v1523_v61  ;;  %v1459_v42 = vmul.f32 %v2992_v31, %v1423_v34 }
 0x19e   : > { %v1186_v23 = vadd.f32 %v1154_v6, %v1085_v26  ;;  %v1187_v3 = vadd.f32 %v1155_v24, %v1086_v10  ;;  %v1460_v16 = vmul.f32 %v2992_v31, %v1424_v2  ;;  %v1560_v53 = vmul.f32 %v3021_v44, %v1524_v35  ;;  %v3212_v31 = vld [vmem:[%s3326_s6] ss:$0 sm:$0xff] }
 0x19f   : > { %v1629_v54 = vadd.f32 %v3121_v27, %v1590_v36  ;;  %v1630_v57 = vadd.f32 %v3121_v27, %v1591_v17  ;;  %v1561_v51 = vmul.f32 %v3021_v44, %v1525_v25 }
 0x1a0   : > { %v1287_v52 = vadd.f32 %v1255_v37, %v1186_v23  ;;  %v1288_v43 = vadd.f32 %v1256_v56, %v1187_v3 }
 0x1a1   : > { %v1647_v14 = vpack.c.bf16 %v1630_v57, %v1629_v54 }
 0x1a2   : > { %v1390_v19 = vadd.f32 %v1358_v55, %v1287_v52  ;;  %v1391_v11 = vadd.f32 %v1358_v55, %v1288_v43 }
 0x1a3   : > { %2203 = vmatprep.mubr.bf16.mxu1 %v1647_v14 }
 0x1a4   : > { %v1491_v22 = vadd.f32 %v1459_v42, %v1390_v19  ;;  %v1492_v7 = vadd.f32 %v1460_v16, %v1391_v11 }
 0x1a6   : > { %v1592_v38 = vadd.f32 %v1560_v53, %v1491_v22  ;;  %v1593_v8 = vadd.f32 %v1561_v51, %v1492_v7 }
 0x1a8   : > { %v1631_v49 = vadd.f32 %v3121_v27, %v1592_v38  ;;  %v1632_v60 = vadd.f32 %v3121_v27, %v1593_v8 }
 0x1aa   : > { %v1648_v40 = vpack.c.bf16 %v1632_v60, %v1631_v49 }
 0x1ac   : > { %2204 = vmatmul.mubr.bf16.gmra.mrb[28].mxu1 %v1648_v40 }
 0x1f4   : > { %v2177_v0 = vpop.f32.mrb[0].mxu1 }
 0x1f5   : > { %v1763_v28 = vadd.f32 %v2177_v0, %v3212_v31  ;;  %v1754_v32 = vpop.f32.mrb[1].mxu1 }
 0x1f6   : > { %v1755_v44 = vadd.f32 %v3212_v31, %v1754_v32  ;;  %v2178_v27 = vpop.f32.mrb[2].mxu1 }
 0x1f7   : > { %v1883_v9 = vmax.f32 %v1763_v28, 0.0  ;;  %v1766_v41 = vadd.f32 %v2178_v27, %v3212_v31  ;;  %v1757_v4 = vpop.f32.mrb[3].mxu1 }
 0x1f8   : > { %v1881_v61 = vmax.f32 %v1755_v44, 0.0  ;;  %v1758_v48 = vadd.f32 %v3212_v31, %v1757_v4 }
 0x1f9   : > { %1915 = vst.msk [vmem:[%s3220_s27 + $0x10] sm:$0xff] %vm328_vm0, %v1883_v9  ;;  %v1884_v1 = vmax.f32 %v1766_v41, 0.0 }
 0x1fa   : > { %1913 = vst.msk [vmem:[%s3220_s27] sm:$0xff] %vm328_vm0, %v1881_v61  ;;  %v1882_v45 = vmax.f32 %v1758_v48, 0.0 }
 0x1fb   : > { %1916 = vst.msk [vmem:[%s3220_s27 + $0x18] sm:$0xff] %vm328_vm0, %v1884_v1 }
 0x1fc   : > { %1914 = vst.msk [vmem:[%s3220_s27 + $0x8] sm:$0xff] %vm328_vm0, %v1882_v45 }
 0x20d   : > { %v2181_v58 = vpop.f32.mrb[4].mxu1 }
 0x20e   : > { %v1779_v21 = vadd.f32 %v2181_v58, %v3212_v31  ;;  %v1770_v20 = vpop.f32.mrb[5].mxu1 }
 0x20f   : > { %v1771_v47 = vadd.f32 %v3212_v31, %v1770_v20  ;;  %v2182_v62 = vpop.f32.mrb[6].mxu1 }
 0x210   : > { %v1887_v46 = vmax.f32 %v1779_v21, 0.0  ;;  %v1782_v5 = vadd.f32 %v2182_v62, %v3212_v31  ;;  %v1773_v29 = vpop.f32.mrb[7].mxu1 }
 0x211   : > { %v1885_v63 = vmax.f32 %v1771_v47, 0.0  ;;  %v1774_v39 = vadd.f32 %v3212_v31, %v1773_v29 }
 0x212   : > { %1919 = vst.msk [vmem:[%s3220_s27 + $0x30] sm:$0xff] %vm328_vm0, %v1887_v46  ;;  %v1888_v59 = vmax.f32 %v1782_v5, 0.0 }
 0x213   : > { %1917 = vst.msk [vmem:[%s3220_s27 + $0x20] sm:$0xff] %vm328_vm0, %v1885_v63  ;;  %v1886_v33 = vmax.f32 %v1774_v39, 0.0 }
 0x214   : > { %1920 = vst.msk [vmem:[%s3220_s27 + $0x38] sm:$0xff] %vm328_vm0, %v1888_v59 }
 0x215   : > { %1918 = vst.msk [vmem:[%s3220_s27 + $0x28] sm:$0xff] %vm328_vm0, %v1886_v33 }
 0x221   : > { %v2185_v12 = vpop.f32.mrb[8].mxu1 }
 0x222   : > { %v1795_v50 = vadd.f32 %v2185_v12, %v3212_v31  ;;  %v1786_v18 = vpop.f32.mrb[9].mxu1 }
 0x223   : > { %v1787_v13 = vadd.f32 %v3212_v31, %v1786_v18  ;;  %v2186_v30 = vpop.f32.mrb[10].mxu1 }
 0x224   : > { %v1891_v26 = vmax.f32 %v1795_v50, 0.0  ;;  %v1798_v6 = vadd.f32 %v2186_v30, %v3212_v31  ;;  %v1789_v36 = vpop.f32.mrb[11].mxu1 }
 0x225   : > { %v1889_v17 = vmax.f32 %v1787_v13, 0.0  ;;  %v1790_v10 = vadd.f32 %v3212_v31, %v1789_v36 }
 0x226   : > { %1923 = vst.msk [vmem:[%s3220_s27 + $0x50] sm:$0xff] %vm328_vm0, %v1891_v26  ;;  %v1892_v24 = vmax.f32 %v1798_v6, 0.0 }
 0x227   : > { %1921 = vst.msk [vmem:[%s3220_s27 + $0x40] sm:$0xff] %vm328_vm0, %v1889_v17  ;;  %v1890_v34 = vmax.f32 %v1790_v10, 0.0 }
 0x228   : > { %1924 = vst.msk [vmem:[%s3220_s27 + $0x58] sm:$0xff] %vm328_vm0, %v1892_v24 }
 0x229   : > { %1922 = vst.msk [vmem:[%s3220_s27 + $0x48] sm:$0xff] %vm328_vm0, %v1890_v34 }
 0x236   : > { %v2189_v23 = vpop.f32.mrb[12].mxu1 }
 0x237   : > { %v1811_v37 = vadd.f32 %v2189_v23, %v3212_v31  ;;  %v1802_v15 = vpop.f32.mrb[13].mxu1 }
 0x238   : > { %v1803_v55 = vadd.f32 %v3212_v31, %v1802_v15  ;;  %v2190_v2 = vpop.f32.mrb[14].mxu1 }
 0x239   : > { %v1895_v54 = vmax.f32 %v1811_v37, 0.0  ;;  %v1814_v57 = vadd.f32 %v2190_v2, %v3212_v31  ;;  %v1805_v3 = vpop.f32.mrb[15].mxu1 }
 0x23a   : > { %v1893_v56 = vmax.f32 %v1803_v55, 0.0  ;;  %v1806_v35 = vadd.f32 %v3212_v31, %v1805_v3 }
 0x23b   : > { %1927 = vst.msk [vmem:[%s3220_s27 + $0x70] sm:$0xff] %vm328_vm0, %v1895_v54  ;;  %v1896_v52 = vmax.f32 %v1814_v57, 0.0 }
 0x23c   : > { %1925 = vst.msk [vmem:[%s3220_s27 + $0x60] sm:$0xff] %vm328_vm0, %v1893_v56  ;;  %v1894_v42 = vmax.f32 %v1806_v35, 0.0 }
 0x23d   : > { %1928 = vst.msk [vmem:[%s3220_s27 + $0x78] sm:$0xff] %vm328_vm0, %v1896_v52 }
 0x23e   : > { %1926 = vst.msk [vmem:[%s3220_s27 + $0x68] sm:$0xff] %vm328_vm0, %v1894_v42 }
 0x248   : > { %v2193_v25 = vpop.f32.mrb[16].mxu1 }
 0x249   : > { %v1827_v14 = vadd.f32 %v2193_v25, %v3212_v31  ;;  %v1818_v43 = vpop.f32.mrb[17].mxu1 }
 0x24a   : > { %v1819_v16 = vadd.f32 %v3212_v31, %v1818_v43  ;;  %v2194_v19 = vpop.f32.mrb[18].mxu1 }
 0x24b   : > { %v1899_v53 = vmax.f32 %v1827_v14, 0.0  ;;  %v1830_v11 = vadd.f32 %v2194_v19, %v3212_v31  ;;  %v1821_v51 = vpop.f32.mrb[19].mxu1 }
 0x24c   : > { %v1897_v22 = vmax.f32 %v1819_v16, 0.0  ;;  %v1822_v7 = vadd.f32 %v3212_v31, %v1821_v51 }
 0x24d   : > { %1931 = vst.msk [vmem:[%s3220_s27 + $0x90] sm:$0xff] %vm328_vm0, %v1899_v53  ;;  %v1900_v38 = vmax.f32 %v1830_v11, 0.0 }
 0x24e   : > { %1929 = vst.msk [vmem:[%s3220_s27 + $0x80] sm:$0xff] %vm328_vm0, %v1897_v22  ;;  %v1898_v8 = vmax.f32 %v1822_v7, 0.0 }
 0x24f   : > { %1932 = vst.msk [vmem:[%s3220_s27 + $0x98] sm:$0xff] %vm328_vm0, %v1900_v38 }
 0x250   : > { %1930 = vst.msk [vmem:[%s3220_s27 + $0x88] sm:$0xff] %vm328_vm0, %v1898_v8 }
 0x25b   : > { %v2197_v49 = vpop.f32.mrb[20].mxu1 }
 0x25c   : > { %v1843_v60 = vadd.f32 %v2197_v49, %v3212_v31  ;;  %v1834_v40 = vpop.f32.mrb[21].mxu1 }
 0x25d   : > { %v1835_v0 = vadd.f32 %v3212_v31, %v1834_v40  ;;  %v2198_v28 = vpop.f32.mrb[22].mxu1 }
 0x25e   : > { %v1903_v32 = vmax.f32 %v1843_v60, 0.0  ;;  %v1846_v44 = vadd.f32 %v2198_v28, %v3212_v31  ;;  %v1837_v27 = vpop.f32.mrb[23].mxu1 }
 0x25f   : > { %v1901_v9 = vmax.f32 %v1835_v0, 0.0  ;;  %v1838_v41 = vadd.f32 %v3212_v31, %v1837_v27 }
 0x260   : > { %1935 = vst.msk [vmem:[%s3220_s27 + $0xb0] sm:$0xff] %vm328_vm0, %v1903_v32  ;;  %v1904_v4 = vmax.f32 %v1846_v44, 0.0 }
 0x261   : > { %1933 = vst.msk [vmem:[%s3220_s27 + $0xa0] sm:$0xff] %vm328_vm0, %v1901_v9  ;;  %v1902_v61 = vmax.f32 %v1838_v41, 0.0 }
 0x262   : > { %1936 = vst.msk [vmem:[%s3220_s27 + $0xb8] sm:$0xff] %vm328_vm0, %v1904_v4 }
 0x263   : > { %1934 = vst.msk [vmem:[%s3220_s27 + $0xa8] sm:$0xff] %vm328_vm0, %v1902_v61 }
 0x26d   : > { %v2201_v48 = vpop.f32.mrb[24].mxu1 }
 0x26e   : > { %v1859_v1 = vadd.f32 %v2201_v48, %v3212_v31  ;;  %v1850_v45 = vpop.f32.mrb[25].mxu1 }
 0x26f   : > { %v1851_v58 = vadd.f32 %v3212_v31, %v1850_v45  ;;  %v2202_v21 = vpop.f32.mrb[26].mxu1 }
 0x270   : > { %v1907_v20 = vmax.f32 %v1859_v1, 0.0  ;;  %v1862_v47 = vadd.f32 %v2202_v21, %v3212_v31  ;;  %v1853_v62 = vpop.f32.mrb[27].mxu1 }
 0x271   : > { %v1905_v46 = vmax.f32 %v1851_v58, 0.0  ;;  %v1854_v5 = vadd.f32 %v3212_v31, %v1853_v62 }
 0x272   : > { %1939 = vst.msk [vmem:[%s3220_s27 + $0xd0] sm:$0xff] %vm328_vm0, %v1907_v20  ;;  %v1908_v29 = vmax.f32 %v1862_v47, 0.0 }
 0x273   : > { %1937 = vst.msk [vmem:[%s3220_s27 + $0xc0] sm:$0xff] %vm328_vm0, %v1905_v46  ;;  %v1906_v63 = vmax.f32 %v1854_v5, 0.0 }
 0x274   : > { %1940 = vst.msk [vmem:[%s3220_s27 + $0xd8] sm:$0xff] %vm328_vm0, %v1908_v29 }
 0x275   : > { %1938 = vst.msk [vmem:[%s3220_s27 + $0xc8] sm:$0xff] %vm328_vm0, %v1906_v63 }
 0x27f   : > { %v2205_v39 = vpop.f32.mrb[28].mxu1 }
 0x280   : > { %v1875_v59 = vadd.f32 %v2205_v39, %v3212_v31  ;;  %v1866_v33 = vpop.f32.mrb[29].mxu1 }
 0x281   : > { %v1867_v12 = vadd.f32 %v3212_v31, %v1866_v33  ;;  %v2206_v50 = vpop.f32.mrb[30].mxu1 }
 0x282   : > { %v1911_v18 = vmax.f32 %v1875_v59, 0.0  ;;  %v1878_v13 = vadd.f32 %v2206_v50, %v3212_v31  ;;  %v1869_v30 = vpop.f32.mrb[31].mxu1 }
 0x283   : > { %v1909_v26 = vmax.f32 %v1867_v12, 0.0  ;;  %v1870_v6 = vadd.f32 %v3212_v31, %v1869_v30 }
 0x284   : > { %1943 = vst.msk [vmem:[%s3220_s27 + $0xf0] sm:$0xff] %vm328_vm0, %v1911_v18  ;;  %v1912_v36 = vmax.f32 %v1878_v13, 0.0 }
 0x285   : > { %1941 = vst.msk [vmem:[%s3220_s27 + $0xe0] sm:$0xff] %vm328_vm0, %v1909_v26  ;;  %v1910_v17 = vmax.f32 %v1870_v6, 0.0 }
 0x286   : > { %1944 = vst.msk [vmem:[%s3220_s27 + $0xf8] sm:$0xff] %vm328_vm0, %v1912_v36 }
 0x287   : > { %1942 = vst.msk [vmem:[%s3220_s27 + $0xe8] sm:$0xff] %vm328_vm0, %v1910_v17 }
 0x288 PF: > { %s17_s24 = sadd.s32 1, %s2249_s24  }
 0x289   : > { %p14_p4 = scmp.ge.s32.totalorder %s17_s24, 4  }
 0x28b   :  { %16 = sbr.rel (!%p14_p4) target bundleno = 1 (0x1), region = 83 }

</bundles_post_ra>
